<compile_context>
chip_gen: v6e
topology: v6e:2x2x1
jax: 0.10.0
libtpu: 0.0.40
codegen_flags: <defaults>
</compile_context>

<pallas_src>
import functools
import math

import jax
import jax.numpy as jnp
from jax.experimental import pallas as pl
from jax.experimental.pallas import tpu as pltpu

LN_EPS = 1e-5
NEG_INF = -1e30


def _layer_norm(v, g, b):
    mu = jnp.mean(v, axis=-1, keepdims=True)
    var = jnp.mean((v - mu) ** 2, axis=-1, keepdims=True)
    return (v - mu) * jax.lax.rsqrt(var + LN_EPS) * g + b


def _mha(q, k, v, wo_h, n_heads, mask):
    """Head-batched attention with the output projection folded in.

    q: [Lq, D] f32, k/v: [S, D] f32, wo_h: [H, E, D] bf16, mask: [Lq, S] bool or None.
    Returns [Lq, D] f32 (projected, no output bias).
    """
    Lq, D = q.shape
    S = k.shape[0]
    H = n_heads
    E = D // H
    scale = 1.0 / math.sqrt(E)

    qh = q.reshape(Lq, H, E).swapaxes(0, 1)    # [H, Lq, E]
    kh = k.reshape(S, H, E).swapaxes(0, 1)     # [H, S, E]
    vh = v.reshape(S, H, E).swapaxes(0, 1)     # [H, S, E]

    s = jnp.einsum('hqe,hke->hqk', qh.astype(jnp.bfloat16), kh.astype(jnp.bfloat16),
                   preferred_element_type=jnp.float32) * scale          # [H, Lq, S]
    if mask is not None:
        s = jnp.where(mask[None], NEG_INF, s)
    m = jnp.max(s, axis=-1, keepdims=True)
    p = jnp.exp(s - m)
    a = p * pl.reciprocal(jnp.sum(p, axis=-1, keepdims=True), approx=True)
    o = jnp.einsum('hqk,hke->hqe', a.astype(jnp.bfloat16), vh.astype(jnp.bfloat16),
                   preferred_element_type=jnp.float32)                   # [H, Lq, E]
    # Fold the head re-concat into the output projection: batched over H, summed.
    proj = jnp.einsum('hqe,hed->hqd', o.astype(jnp.bfloat16), wo_h,
                      preferred_element_type=jnp.float32)                # [H, Lq, D]
    return jnp.sum(proj, axis=0)


def decoder_layer_kernel(
        x_ref, cross_ref,
        wq1_ref, wkv1_ref, wo1_ref,
        wq2_ref, wkv2_ref, wo2_ref,
        wff1_ref, wff2_ref,
        pvec_ref, bff1_ref,
        o_ref, *, n_heads, tile_l):
    L = x_ref.shape[1]
    D = x_ref.shape[2]

    row0 = pl.program_id(1) * tile_l
    if tile_l % 8 == 0:
        row0 = pl.multiple_of(row0, 8)

    xf = x_ref[0].astype(jnp.float32)                            # [L, D]  self-attn K/V source
    xt = x_ref[0, pl.ds(row0, tile_l), :].astype(jnp.float32)    # [TL, D] query tile / residual
    cross = cross_ref[0].astype(jnp.float32)                     # [S, D]

    prm = pvec_ref[...]                                          # [16, D] f32 slab
    bq1, bk1, bv1, bo1 = prm[0], prm[1], prm[2], prm[3]
    g1, be1 = prm[4], prm[5]
    bq2, bk2, bv2, bo2 = prm[6], prm[7], prm[8], prm[9]
    g2, be2 = prm[10], prm[11]
    bff2 = prm[12]
    g3, be3 = prm[13], prm[14]

    # ---- self attention (causal) + residual + norm1 ----
    q = jnp.dot(xt.astype(jnp.bfloat16), wq1_ref[...],
                preferred_element_type=jnp.float32) + bq1
    kv = jnp.dot(xf.astype(jnp.bfloat16), wkv1_ref[...],
                 preferred_element_type=jnp.float32)
    k = kv[:, :D] + bk1
    v = kv[:, D:] + bv1
    qi = jax.lax.broadcasted_iota(jnp.int32, (tile_l, L), 0) + row0
    ki = jax.lax.broadcasted_iota(jnp.int32, (tile_l, L), 1)
    sa = _mha(q, k, v, wo1_ref[...], n_heads, ki > qi) + bo1
    x1 = _layer_norm(xt + sa, g1, be1)

    # ---- cross attention (full) + residual + norm2 ----
    q = jnp.dot(x1.astype(jnp.bfloat16), wq2_ref[...],
                preferred_element_type=jnp.float32) + bq2
    kv = jnp.dot(cross.astype(jnp.bfloat16), wkv2_ref[...],
                 preferred_element_type=jnp.float32)
    k = kv[:, :D] + bk2
    v = kv[:, D:] + bv2
    ca = _mha(q, k, v, wo2_ref[...], n_heads, None) + bo2
    x2 = _layer_norm(x1 + ca, g2, be2)

    # ---- pointwise FFN: conv1 (k=1) -> relu -> conv2 (k=1), residual, norm3 ----
    h = jnp.dot(x2.astype(jnp.bfloat16), wff1_ref[...],
                preferred_element_type=jnp.float32) + bff1_ref[...]
    h = jnp.maximum(h, 0.0)                                      # activation='relu'
    ffn = jnp.dot(h.astype(jnp.bfloat16), wff2_ref[...],
                  preferred_element_type=jnp.float32) + bff2
    o_ref[0] = _layer_norm(x2 + ffn, g3, be3).astype(o_ref.dtype)


def decoder_layer(x, cross, params, n_heads):
    """x: [B, L, D], cross: [B, S, D]; params hold PyTorch-convention tensors."""
    B, L, D = x.shape
    S = cross.shape[1]
    F = params['conv1_w'].shape[0]
    H = n_heads
    E = D // H

    bf16 = lambda a: a.astype(jnp.bfloat16)
    f32 = lambda a: a.astype(jnp.float32)

    # Weights in math orientation ([in, out]) and bf16 for the MXU.
    wq1 = bf16(params['wq1'].T)                                              # [D, D]
    wkv1 = bf16(jnp.concatenate([params['wk1'].T, params['wv1'].T], axis=1))  # [D, 2D]
    wo1 = bf16(params['wo1'].T.reshape(H, E, D))                             # [H, E, D]
    wq2 = bf16(params['wq2'].T)
    wkv2 = bf16(jnp.concatenate([params['wk2'].T, params['wv2'].T], axis=1))
    wo2 = bf16(params['wo2'].T.reshape(H, E, D))
    wff1 = bf16(params['conv1_w'][:, :, 0].T)                                # [D, F]
    wff2 = bf16(params['conv2_w'][:, :, 0].T)                                # [F, D]

    # All D-wide biases / LayerNorm params packed into one f32 slab (one DMA).
    rows = [params['bq1'], params['bk1'], params['bv1'], params['bo1'],
            params['ln1_g'], params['ln1_b'],
            params['bq2'], params['bk2'], params['bv2'], params['bo2'],
            params['ln2_g'], params['ln2_b'],
            params['conv2_b'], params['ln3_g'], params['ln3_b']]
    pvec = jnp.zeros((16, D), jnp.float32).at[:15].set(
        jnp.stack([f32(r) for r in rows]))
    bff1 = f32(params['conv1_b']).reshape(1, F)

    # Query-tile size: tile L when it divides cleanly, else process it whole.
    TL = 128 if (L % 128 == 0) else L
    nL = L // TL

    weights = [wq1, wkv1, wo1, wq2, wkv2, wo2, wff1, wff2, pvec, bff1]

    def wspec(a):
        zeros = (0,) * a.ndim
        return pl.BlockSpec(a.shape, lambda b, l, _z=zeros: _z)

    flops = 2 * B * nL * (
        TL * D * D + L * 2 * D * D + 2 * TL * L * D + TL * D * D        # self attn
        + TL * D * D + S * 2 * D * D + 2 * TL * S * D + TL * D * D      # cross attn
        + 2 * TL * D * F)                                                # ffn
    transcendentals = B * n_heads * (L * L + L * S) + 6 * B * L
    w_bytes = sum(w.size * w.dtype.itemsize for w in weights)
    bytes_accessed = (x.dtype.itemsize * B * nL * (L + S) * D
                      + x.dtype.itemsize * B * L * D + w_bytes)

    out = pl.pallas_call(
        functools.partial(decoder_layer_kernel, n_heads=n_heads, tile_l=TL),
        out_shape=jax.ShapeDtypeStruct((B, L, D), x.dtype),
        grid=(B, nL),
        in_specs=[pl.BlockSpec((1, L, D), lambda b, l: (b, 0, 0)),
                  pl.BlockSpec((1, S, D), lambda b, l: (b, 0, 0))]
                 + [wspec(w) for w in weights],
        out_specs=pl.BlockSpec((1, TL, D), lambda b, l: (b, l, 0)),
        compiler_params=pltpu.CompilerParams(
            dimension_semantics=("parallel", "parallel"),
            vmem_limit_bytes=48 * 1024 * 1024),
        cost_estimate=pl.CostEstimate(flops=int(flops),
                                      transcendentals=int(transcendentals),
                                      bytes_accessed=int(bytes_accessed)),
    )(x, cross, *weights)
    return out


def decoder_layer_ref(x, cross, params, n_heads):
    """Pure-JAX reference mirroring the PyTorch forward (eval mode)."""
    def ln(v, g, b):
        mu = v.mean(-1, keepdims=True)
        var = ((v - mu) ** 2).mean(-1, keepdims=True)
        return (v - mu) / jnp.sqrt(var + LN_EPS) * g + b

    def mha(q_in, kv_in, wq, bq, wk, bk, wv, bv, wo, bo, causal):
        B, L, D = q_in.shape
        S = kv_in.shape[1]
        H = n_heads
        E = D // H
        q = (q_in @ wq.T + bq).reshape(B, L, H, E)
        k = (kv_in @ wk.T + bk).reshape(B, S, H, E)
        v = (kv_in @ wv.T + bv).reshape(B, S, H, E)
        s = jnp.einsum('blhe,bshe->bhls', q, k) * (1.0 / math.sqrt(E))
        if causal:
            mask = jnp.triu(jnp.ones((L, S), bool), 1)
            s = jnp.where(mask[None, None], NEG_INF, s)
        a = jax.nn.softmax(s, axis=-1)
        o = jnp.einsum('bhls,bshe->blhe', a, v).reshape(B, L, D)
        return o @ wo.T + bo

    p = params
    x = x.astype(jnp.float32)
    cross = cross.astype(jnp.float32)
    sa = mha(x, x, p['wq1'], p['bq1'], p['wk1'], p['bk1'], p['wv1'], p['bv1'],
             p['wo1'], p['bo1'], causal=True)
    x = ln(x + sa, p['ln1_g'], p['ln1_b'])
    ca = mha(x, cross, p['wq2'], p['bq2'], p['wk2'], p['bk2'], p['wv2'], p['bv2'],
             p['wo2'], p['bo2'], causal=False)
    x = ln(x + ca, p['ln2_g'], p['ln2_b'])
    h = jax.nn.relu(x @ p['conv1_w'][:, :, 0].T + p['conv1_b'])
    y = h @ p['conv2_w'][:, :, 0].T + p['conv2_b']
    return ln(x + y, p['ln3_g'], p['ln3_b'])


if __name__ == "__main__":
    B, L, S = 2, 8, 12           # decoder len L, encoder (cross) len S
    D, H, F = 32, 4, 64          # d_model, n_heads, d_ff

    keys = jax.random.split(jax.random.PRNGKey(0), 18)

    def linear(k, d_out, d_in):
        kw, kb = jax.random.split(k)
        s = 1.0 / math.sqrt(d_in)
        w = jax.random.uniform(kw, (d_out, d_in), jnp.float32, -s, s)
        b = jax.random.uniform(kb, (d_out,), jnp.float32, -s, s)
        return w, b

    params = {}
    params['wq1'], params['bq1'] = linear(keys[0], D, D)
    params['wk1'], params['bk1'] = linear(keys[1], D, D)
    params['wv1'], params['bv1'] = linear(keys[2], D, D)
    params['wo1'], params['bo1'] = linear(keys[3], D, D)
    params['wq2'], params['bq2'] = linear(keys[4], D, D)
    params['wk2'], params['bk2'] = linear(keys[5], D, D)
    params['wv2'], params['bv2'] = linear(keys[6], D, D)
    params['wo2'], params['bo2'] = linear(keys[7], D, D)
    w1, b1 = linear(keys[8], F, D)              # Conv1d(d_model, d_ff, 1)
    params['conv1_w'], params['conv1_b'] = w1[:, :, None], b1
    w2, b2 = linear(keys[9], D, F)              # Conv1d(d_ff, d_model, 1)
    params['conv2_w'], params['conv2_b'] = w2[:, :, None], b2
    params['ln1_g'] = 1.0 + 0.1 * jax.random.normal(keys[10], (D,), jnp.float32)
    params['ln1_b'] = 0.05 * jax.random.normal(keys[11], (D,), jnp.float32)
    params['ln2_g'] = 1.0 + 0.1 * jax.random.normal(keys[12], (D,), jnp.float32)
    params['ln2_b'] = 0.05 * jax.random.normal(keys[13], (D,), jnp.float32)
    params['ln3_g'] = 1.0 + 0.1 * jax.random.normal(keys[14], (D,), jnp.float32)
    params['ln3_b'] = 0.05 * jax.random.normal(keys[15], (D,), jnp.float32)

    x = jax.random.normal(keys[16], (B, L, D), jnp.float32)
    cross = jax.random.normal(keys[17], (B, S, D), jnp.float32)

    out = decoder_layer(x, cross, params, n_heads=H)
    out = jax.block_until_ready(out)

    ref = decoder_layer_ref(x, cross, params, n_heads=H)
    assert out.shape == (B, L, D), out.shape
    max_err = jnp.max(jnp.abs(out.astype(jnp.float32) - ref))
    # bf16 MXU operands + approx reciprocal in the softmax -> looser tolerance.
    assert jnp.allclose(out.astype(jnp.float32), ref, rtol=5e-2, atol=5e-2), \
        f"max abs err {max_err}"

    print("KERNEL_OK")
</pallas_src>

<mosaic_0001>
module attributes {stable_mosaic.version = 11 : i64} {
  func.func @decoder_layer_kernel(%arg0: i32, %arg1: i32, %arg2: memref<1x8x32xf32, #tpu.memory_space<vmem>>, %arg3: memref<1x12x32xf32, #tpu.memory_space<vmem>>, %arg4: memref<32x32xbf16, #tpu.memory_space<vmem>>, %arg5: memref<32x64xbf16, #tpu.memory_space<vmem>>, %arg6: memref<4x8x32xbf16, #tpu.memory_space<vmem>>, %arg7: memref<32x32xbf16, #tpu.memory_space<vmem>>, %arg8: memref<32x64xbf16, #tpu.memory_space<vmem>>, %arg9: memref<4x8x32xbf16, #tpu.memory_space<vmem>>, %arg10: memref<32x64xbf16, #tpu.memory_space<vmem>>, %arg11: memref<64x32xbf16, #tpu.memory_space<vmem>>, %arg12: memref<16x32xf32, #tpu.memory_space<vmem>>, %arg13: memref<1x64xf32, #tpu.memory_space<vmem>>, %arg14: memref<1x8x32xf32, #tpu.memory_space<vmem>>) attributes {dimension_semantics = [#tpu.dimension_semantics<parallel>, #tpu.dimension_semantics<parallel>], iteration_bounds = array<i64: 2, 1>, scalar_prefetch = 0 : i64, scratch_operands = 0 : i64, tpu.core_type = #tpu.core_type<tc>, window_params = [{transform_indices = @transform_0, window_bounds = array<i64: 1, 8, 32>}, {transform_indices = @transform_1, window_bounds = array<i64: 1, 12, 32>}, {pipeline_mode = #tpu.pipeline_mode<synchronous>, transform_indices = @transform_2, window_bounds = array<i64: 32, 32>}, {pipeline_mode = #tpu.pipeline_mode<synchronous>, transform_indices = @transform_3, window_bounds = array<i64: 32, 64>}, {pipeline_mode = #tpu.pipeline_mode<synchronous>, transform_indices = @transform_4, window_bounds = array<i64: 4, 8, 32>}, {pipeline_mode = #tpu.pipeline_mode<synchronous>, transform_indices = @transform_5, window_bounds = array<i64: 32, 32>}, {pipeline_mode = #tpu.pipeline_mode<synchronous>, transform_indices = @transform_6, window_bounds = array<i64: 32, 64>}, {pipeline_mode = #tpu.pipeline_mode<synchronous>, transform_indices = @transform_7, window_bounds = array<i64: 4, 8, 32>}, {pipeline_mode = #tpu.pipeline_mode<synchronous>, transform_indices = @transform_8, window_bounds = array<i64: 32, 64>}, {pipeline_mode = #tpu.pipeline_mode<synchronous>, transform_indices = @transform_9, window_bounds = array<i64: 64, 32>}, {pipeline_mode = #tpu.pipeline_mode<synchronous>, transform_indices = @transform_10, window_bounds = array<i64: 16, 32>}, {pipeline_mode = #tpu.pipeline_mode<synchronous>, transform_indices = @transform_11, window_bounds = array<i64: 1, 64>}, {transform_indices = @transform_12, window_bounds = array<i64: 1, 8, 32>}]} {
    %c8_i32 = arith.constant 8 : i32
    %0 = arith.muli %arg1, %c8_i32 : i32
    %1 = tpu.assume_multiple %0, 8 : i32
    %c0 = arith.constant 0 : index
    %c0_0 = arith.constant 0 : index
    %c0_1 = arith.constant 0 : index
    %2 = vector.load %arg2[%c0, %c0_0, %c0_1] : memref<1x8x32xf32, #tpu.memory_space<vmem>>, vector<1x8x32xf32>
    %3 = vector.shape_cast %2 : vector<1x8x32xf32> to vector<8x32xf32>
    %c0_2 = arith.constant 0 : index
    %4 = arith.index_cast %1 : i32 to index
    %c0_3 = arith.constant 0 : index
    %5 = vector.load %arg2[%c0_2, %4, %c0_3] : memref<1x8x32xf32, #tpu.memory_space<vmem>>, vector<1x8x32xf32>
    %6 = vector.shape_cast %5 : vector<1x8x32xf32> to vector<8x32xf32>
    %c0_4 = arith.constant 0 : index
    %c0_5 = arith.constant 0 : index
    %c0_6 = arith.constant 0 : index
    %7 = vector.load %arg3[%c0_4, %c0_5, %c0_6] : memref<1x12x32xf32, #tpu.memory_space<vmem>>, vector<1x12x32xf32>
    %8 = vector.shape_cast %7 : vector<1x12x32xf32> to vector<12x32xf32>
    %c0_7 = arith.constant 0 : index
    %c0_8 = arith.constant 0 : index
    %9 = vector.load %arg12[%c0_7, %c0_8] : memref<16x32xf32, #tpu.memory_space<vmem>>, vector<16x32xf32>
    %10 = vector.extract_strided_slice %9 {offsets = [0, 0], sizes = [1, 32], strides = [1, 1]} : vector<16x32xf32> to vector<1x32xf32>
    %11 = vector.shape_cast %10 : vector<1x32xf32> to vector<32xf32>
    %12 = vector.extract_strided_slice %9 {offsets = [1, 0], sizes = [1, 32], strides = [1, 1]} : vector<16x32xf32> to vector<1x32xf32>
    %13 = vector.shape_cast %12 : vector<1x32xf32> to vector<32xf32>
    %14 = vector.extract_strided_slice %9 {offsets = [2, 0], sizes = [1, 32], strides = [1, 1]} : vector<16x32xf32> to vector<1x32xf32>
    %15 = vector.shape_cast %14 : vector<1x32xf32> to vector<32xf32>
    %16 = vector.extract_strided_slice %9 {offsets = [3, 0], sizes = [1, 32], strides = [1, 1]} : vector<16x32xf32> to vector<1x32xf32>
    %17 = vector.shape_cast %16 : vector<1x32xf32> to vector<32xf32>
    %18 = vector.extract_strided_slice %9 {offsets = [4, 0], sizes = [1, 32], strides = [1, 1]} : vector<16x32xf32> to vector<1x32xf32>
    %19 = vector.shape_cast %18 : vector<1x32xf32> to vector<32xf32>
    %20 = vector.extract_strided_slice %9 {offsets = [5, 0], sizes = [1, 32], strides = [1, 1]} : vector<16x32xf32> to vector<1x32xf32>
    %21 = vector.shape_cast %20 : vector<1x32xf32> to vector<32xf32>
    %22 = vector.extract_strided_slice %9 {offsets = [6, 0], sizes = [1, 32], strides = [1, 1]} : vector<16x32xf32> to vector<1x32xf32>
    %23 = vector.shape_cast %22 : vector<1x32xf32> to vector<32xf32>
    %24 = vector.extract_strided_slice %9 {offsets = [7, 0], sizes = [1, 32], strides = [1, 1]} : vector<16x32xf32> to vector<1x32xf32>
    %25 = vector.shape_cast %24 : vector<1x32xf32> to vector<32xf32>
    %26 = vector.extract_strided_slice %9 {offsets = [8, 0], sizes = [1, 32], strides = [1, 1]} : vector<16x32xf32> to vector<1x32xf32>
    %27 = vector.shape_cast %26 : vector<1x32xf32> to vector<32xf32>
    %28 = vector.extract_strided_slice %9 {offsets = [9, 0], sizes = [1, 32], strides = [1, 1]} : vector<16x32xf32> to vector<1x32xf32>
    %29 = vector.shape_cast %28 : vector<1x32xf32> to vector<32xf32>
    %30 = vector.extract_strided_slice %9 {offsets = [10, 0], sizes = [1, 32], strides = [1, 1]} : vector<16x32xf32> to vector<1x32xf32>
    %31 = vector.shape_cast %30 : vector<1x32xf32> to vector<32xf32>
    %32 = vector.extract_strided_slice %9 {offsets = [11, 0], sizes = [1, 32], strides = [1, 1]} : vector<16x32xf32> to vector<1x32xf32>
    %33 = vector.shape_cast %32 : vector<1x32xf32> to vector<32xf32>
    %34 = vector.extract_strided_slice %9 {offsets = [12, 0], sizes = [1, 32], strides = [1, 1]} : vector<16x32xf32> to vector<1x32xf32>
    %35 = vector.shape_cast %34 : vector<1x32xf32> to vector<32xf32>
    %36 = vector.extract_strided_slice %9 {offsets = [13, 0], sizes = [1, 32], strides = [1, 1]} : vector<16x32xf32> to vector<1x32xf32>
    %37 = vector.shape_cast %36 : vector<1x32xf32> to vector<32xf32>
    %38 = vector.extract_strided_slice %9 {offsets = [14, 0], sizes = [1, 32], strides = [1, 1]} : vector<16x32xf32> to vector<1x32xf32>
    %39 = vector.shape_cast %38 : vector<1x32xf32> to vector<32xf32>
    %40 = arith.truncf %6 : vector<8x32xf32> to vector<8x32xbf16>
    %c0_9 = arith.constant 0 : index
    %c0_10 = arith.constant 0 : index
    %41 = vector.load %arg4[%c0_9, %c0_10] : memref<32x32xbf16, #tpu.memory_space<vmem>>, vector<32x32xbf16>
    %cst = arith.constant dense<0.000000e+00> : vector<8x32xf32>
    %42 = tpu.matmul %40, %41, %cst {dimension_numbers = #tpu.dot_dimension_numbers<[1], [0], [0], [1], [0, 0, 1, 1], [], []>} : vector<8x32xbf16>, vector<32x32xbf16>, vector<8x32xf32> -> vector<8x32xf32>
    %43 = vector.shape_cast %11 : vector<32xf32> to vector<1x32xf32>
    %44 = vector.broadcast %43 : vector<1x32xf32> to vector<8x32xf32>
    %45 = arith.addf %42, %44 : vector<8x32xf32>
    %46 = arith.truncf %3 : vector<8x32xf32> to vector<8x32xbf16>
    %c0_11 = arith.constant 0 : index
    %c0_12 = arith.constant 0 : index
    %47 = vector.load %arg5[%c0_11, %c0_12] : memref<32x64xbf16, #tpu.memory_space<vmem>>, vector<32x64xbf16>
    %cst_13 = arith.constant dense<0.000000e+00> : vector<8x64xf32>
    %48 = tpu.matmul %46, %47, %cst_13 {dimension_numbers = #tpu.dot_dimension_numbers<[1], [0], [0], [1], [0, 0, 1, 1], [], []>} : vector<8x32xbf16>, vector<32x64xbf16>, vector<8x64xf32> -> vector<8x64xf32>
    %49 = vector.extract_strided_slice %48 {offsets = [0, 0], sizes = [8, 32], strides = [1, 1]} : vector<8x64xf32> to vector<8x32xf32>
    %50 = vector.shape_cast %13 : vector<32xf32> to vector<1x32xf32>
    %51 = vector.broadcast %50 : vector<1x32xf32> to vector<8x32xf32>
    %52 = arith.addf %49, %51 : vector<8x32xf32>
    %53 = vector.extract_strided_slice %48 {offsets = [0, 32], sizes = [8, 32], strides = [1, 1]} : vector<8x64xf32> to vector<8x32xf32>
    %54 = vector.shape_cast %15 : vector<32xf32> to vector<1x32xf32>
    %55 = vector.broadcast %54 : vector<1x32xf32> to vector<8x32xf32>
    %56 = arith.addf %53, %55 : vector<8x32xf32>
    %57 = tpu.iota {dimensions = array<i32: 0>} : vector<8x8xi32>
    %58 = vector.broadcast %1 : i32 to vector<8x8xi32>
    %59 = arith.addi %57, %58 : vector<8x8xi32>
    %60 = tpu.iota {dimensions = array<i32: 1>} : vector<8x8xi32>
    %c0_14 = arith.constant 0 : index
    %c0_15 = arith.constant 0 : index
    %c0_16 = arith.constant 0 : index
    %61 = vector.load %arg6[%c0_14, %c0_15, %c0_16] : memref<4x8x32xbf16, #tpu.memory_space<vmem>>, vector<4x8x32xbf16>
    %62 = arith.cmpi sgt, %60, %59 : vector<8x8xi32>
    %63 = vector.shape_cast %45 : vector<8x32xf32> to vector<8x4x8xf32>
    %64 = tpu.transpose %63, [1, 0, 2] : vector<8x4x8xf32> -> vector<4x8x8xf32>
    %65 = vector.shape_cast %52 : vector<8x32xf32> to vector<8x4x8xf32>
    %66 = tpu.transpose %65, [1, 0, 2] : vector<8x4x8xf32> -> vector<4x8x8xf32>
    %67 = vector.shape_cast %56 : vector<8x32xf32> to vector<8x4x8xf32>
    %68 = tpu.transpose %67, [1, 0, 2] : vector<8x4x8xf32> -> vector<4x8x8xf32>
    %69 = arith.truncf %64 : vector<4x8x8xf32> to vector<4x8x8xbf16>
    %70 = arith.truncf %66 : vector<4x8x8xf32> to vector<4x8x8xbf16>
    "tpu.trace_start"() <{level = 10 : i32, message = "hqe,hke->hqk"}> : () -> ()
    %cst_17 = arith.constant dense<0.000000e+00> : vector<4x8x8xf32>
    %71 = tpu.matmul %69, %70, %cst_17 {dimension_numbers = #tpu.dot_dimension_numbers<[2], [2], [1], [1], [0, 0, 0, 1, 1, 1], [0], [0]>} : vector<4x8x8xbf16>, vector<4x8x8xbf16>, vector<4x8x8xf32> -> vector<4x8x8xf32>
    "tpu.trace_stop"() : () -> ()
    %cst_18 = arith.constant 0.353553385 : f32
    %72 = vector.broadcast %cst_18 : f32 to vector<4x8x8xf32>
    %73 = arith.mulf %71, %72 : vector<4x8x8xf32>
    %74 = vector.shape_cast %62 : vector<8x8xi1> to vector<1x8x8xi1>
    %cst_19 = arith.constant -1.000000e+30 : f32
    %75 = vector.shape_cast %74 : vector<1x8x8xi1> to vector<1x8x8xi1>
    %76 = vector.broadcast %75 : vector<1x8x8xi1> to vector<4x8x8xi1>
    %77 = vector.broadcast %cst_19 : f32 to vector<4x8x8xf32>
    %78 = arith.select %76, %77, %73 : vector<4x8x8xi1>, vector<4x8x8xf32>
    %cst_20 = arith.constant dense<0xFF800000> : vector<4x8xf32>
    %79 = vector.multi_reduction <maximumf>, %78, %cst_20 [2] : vector<4x8x8xf32> to vector<4x8xf32>
    %80 = vector.shape_cast %79 : vector<4x8xf32> to vector<4x8x1xf32>
    %81 = vector.broadcast %80 : vector<4x8x1xf32> to vector<4x8x8xf32>
    %82 = arith.subf %78, %81 : vector<4x8x8xf32>
    %83 = math.exp %82 : vector<4x8x8xf32>
    %cst_21 = arith.constant dense<0.000000e+00> : vector<4x8xf32>
    %84 = vector.multi_reduction <add>, %83, %cst_21 [2] : vector<4x8x8xf32> to vector<4x8xf32>
    %85 = vector.shape_cast %84 : vector<4x8xf32> to vector<4x8x1xf32>
    %86 = tpu.reciprocal %85 {approx = true} : vector<4x8x1xf32> -> vector<4x8x1xf32>
    %87 = vector.broadcast %86 : vector<4x8x1xf32> to vector<4x8x8xf32>
    %88 = arith.mulf %83, %87 : vector<4x8x8xf32>
    %89 = arith.truncf %88 : vector<4x8x8xf32> to vector<4x8x8xbf16>
    %90 = arith.truncf %68 : vector<4x8x8xf32> to vector<4x8x8xbf16>
    "tpu.trace_start"() <{level = 10 : i32, message = "hqk,hke->hqe"}> : () -> ()
    %cst_22 = arith.constant dense<0.000000e+00> : vector<4x8x8xf32>
    %91 = tpu.matmul %89, %90, %cst_22 {dimension_numbers = #tpu.dot_dimension_numbers<[2], [1], [1], [2], [0, 0, 0, 1, 1, 2], [0], [0]>} : vector<4x8x8xbf16>, vector<4x8x8xbf16>, vector<4x8x8xf32> -> vector<4x8x8xf32>
    "tpu.trace_stop"() : () -> ()
    %92 = arith.truncf %91 : vector<4x8x8xf32> to vector<4x8x8xbf16>
    "tpu.trace_start"() <{level = 10 : i32, message = "hqe,hed->hqd"}> : () -> ()
    %cst_23 = arith.constant dense<0.000000e+00> : vector<4x8x32xf32>
    %93 = tpu.matmul %92, %61, %cst_23 {dimension_numbers = #tpu.dot_dimension_numbers<[2], [1], [1], [2], [0, 0, 0, 1, 1, 2], [0], [0]>} : vector<4x8x8xbf16>, vector<4x8x32xbf16>, vector<4x8x32xf32> -> vector<4x8x32xf32>
    "tpu.trace_stop"() : () -> ()
    %cst_24 = arith.constant dense<0.000000e+00> : vector<8x32xf32>
    %94 = vector.multi_reduction <add>, %93, %cst_24 [0] : vector<4x8x32xf32> to vector<8x32xf32>
    %95 = vector.shape_cast %17 : vector<32xf32> to vector<1x32xf32>
    %96 = vector.broadcast %95 : vector<1x32xf32> to vector<8x32xf32>
    %97 = arith.addf %94, %96 : vector<8x32xf32>
    %98 = arith.addf %6, %97 : vector<8x32xf32>
    %cst_25 = arith.constant dense<0.000000e+00> : vector<8xf32>
    %99 = vector.multi_reduction <add>, %98, %cst_25 [1] : vector<8x32xf32> to vector<8xf32>
    %100 = vector.shape_cast %99 : vector<8xf32> to vector<8x1xf32>
    %cst_26 = arith.constant 3.200000e+01 : f32
    %101 = vector.broadcast %cst_26 : f32 to vector<8x1xf32>
    %102 = arith.divf %100, %101 : vector<8x1xf32>
    %103 = vector.broadcast %102 : vector<8x1xf32> to vector<8x32xf32>
    %104 = arith.subf %98, %103 : vector<8x32xf32>
    %105 = arith.mulf %104, %104 : vector<8x32xf32>
    %cst_27 = arith.constant dense<0.000000e+00> : vector<8xf32>
    %106 = vector.multi_reduction <add>, %105, %cst_27 [1] : vector<8x32xf32> to vector<8xf32>
    %107 = vector.shape_cast %106 : vector<8xf32> to vector<8x1xf32>
    %cst_28 = arith.constant 3.200000e+01 : f32
    %108 = vector.broadcast %cst_28 : f32 to vector<8x1xf32>
    %109 = arith.divf %107, %108 : vector<8x1xf32>
    %110 = vector.broadcast %102 : vector<8x1xf32> to vector<8x32xf32>
    %111 = arith.subf %98, %110 : vector<8x32xf32>
    %cst_29 = arith.constant 9.99999974E-6 : f32
    %112 = vector.broadcast %cst_29 : f32 to vector<8x1xf32>
    %113 = arith.addf %109, %112 : vector<8x1xf32>
    %114 = math.rsqrt %113 : vector<8x1xf32>
    %115 = vector.broadcast %114 : vector<8x1xf32> to vector<8x32xf32>
    %116 = arith.mulf %111, %115 : vector<8x32xf32>
    %117 = vector.shape_cast %19 : vector<32xf32> to vector<1x32xf32>
    %118 = vector.broadcast %117 : vector<1x32xf32> to vector<8x32xf32>
    %119 = arith.mulf %116, %118 : vector<8x32xf32>
    %120 = vector.shape_cast %21 : vector<32xf32> to vector<1x32xf32>
    %121 = vector.broadcast %120 : vector<1x32xf32> to vector<8x32xf32>
    %122 = arith.addf %119, %121 : vector<8x32xf32>
    %123 = arith.truncf %122 : vector<8x32xf32> to vector<8x32xbf16>
    %c0_30 = arith.constant 0 : index
    %c0_31 = arith.constant 0 : index
    %124 = vector.load %arg7[%c0_30, %c0_31] : memref<32x32xbf16, #tpu.memory_space<vmem>>, vector<32x32xbf16>
    %cst_32 = arith.constant dense<0.000000e+00> : vector<8x32xf32>
    %125 = tpu.matmul %123, %124, %cst_32 {dimension_numbers = #tpu.dot_dimension_numbers<[1], [0], [0], [1], [0, 0, 1, 1], [], []>} : vector<8x32xbf16>, vector<32x32xbf16>, vector<8x32xf32> -> vector<8x32xf32>
    %126 = vector.shape_cast %23 : vector<32xf32> to vector<1x32xf32>
    %127 = vector.broadcast %126 : vector<1x32xf32> to vector<8x32xf32>
    %128 = arith.addf %125, %127 : vector<8x32xf32>
    %129 = arith.truncf %8 : vector<12x32xf32> to vector<12x32xbf16>
    %c0_33 = arith.constant 0 : index
    %c0_34 = arith.constant 0 : index
    %130 = vector.load %arg8[%c0_33, %c0_34] : memref<32x64xbf16, #tpu.memory_space<vmem>>, vector<32x64xbf16>
    %cst_35 = arith.constant dense<0.000000e+00> : vector<12x64xf32>
    %131 = tpu.matmul %129, %130, %cst_35 {dimension_numbers = #tpu.dot_dimension_numbers<[1], [0], [0], [1], [0, 0, 1, 1], [], []>} : vector<12x32xbf16>, vector<32x64xbf16>, vector<12x64xf32> -> vector<12x64xf32>
    %132 = vector.extract_strided_slice %131 {offsets = [0, 0], sizes = [12, 32], strides = [1, 1]} : vector<12x64xf32> to vector<12x32xf32>
    %133 = vector.shape_cast %25 : vector<32xf32> to vector<1x32xf32>
    %134 = vector.broadcast %133 : vector<1x32xf32> to vector<12x32xf32>
    %135 = arith.addf %132, %134 : vector<12x32xf32>
    %136 = vector.extract_strided_slice %131 {offsets = [0, 32], sizes = [12, 32], strides = [1, 1]} : vector<12x64xf32> to vector<12x32xf32>
    %137 = vector.shape_cast %27 : vector<32xf32> to vector<1x32xf32>
    %138 = vector.broadcast %137 : vector<1x32xf32> to vector<12x32xf32>
    %139 = arith.addf %136, %138 : vector<12x32xf32>
    %c0_36 = arith.constant 0 : index
    %c0_37 = arith.constant 0 : index
    %c0_38 = arith.constant 0 : index
    %140 = vector.load %arg9[%c0_36, %c0_37, %c0_38] : memref<4x8x32xbf16, #tpu.memory_space<vmem>>, vector<4x8x32xbf16>
    %141 = vector.shape_cast %128 : vector<8x32xf32> to vector<8x4x8xf32>
    %142 = tpu.transpose %141, [1, 0, 2] : vector<8x4x8xf32> -> vector<4x8x8xf32>
    %143 = vector.shape_cast %135 : vector<12x32xf32> to vector<12x4x8xf32>
    %144 = tpu.transpose %143, [1, 0, 2] : vector<12x4x8xf32> -> vector<4x12x8xf32>
    %145 = vector.shape_cast %139 : vector<12x32xf32> to vector<12x4x8xf32>
    %146 = tpu.transpose %145, [1, 0, 2] : vector<12x4x8xf32> -> vector<4x12x8xf32>
    %147 = arith.truncf %142 : vector<4x8x8xf32> to vector<4x8x8xbf16>
    %148 = arith.truncf %144 : vector<4x12x8xf32> to vector<4x12x8xbf16>
    "tpu.trace_start"() <{level = 10 : i32, message = "hqe,hke->hqk"}> : () -> ()
    %cst_39 = arith.constant dense<0.000000e+00> : vector<4x8x12xf32>
    %149 = tpu.matmul %147, %148, %cst_39 {dimension_numbers = #tpu.dot_dimension_numbers<[2], [2], [1], [1], [0, 0, 0, 1, 1, 1], [0], [0]>} : vector<4x8x8xbf16>, vector<4x12x8xbf16>, vector<4x8x12xf32> -> vector<4x8x12xf32>
    "tpu.trace_stop"() : () -> ()
    %cst_40 = arith.constant 0.353553385 : f32
    %150 = vector.broadcast %cst_40 : f32 to vector<4x8x12xf32>
    %151 = arith.mulf %149, %150 : vector<4x8x12xf32>
    %cst_41 = arith.constant dense<0xFF800000> : vector<4x8xf32>
    %152 = vector.multi_reduction <maximumf>, %151, %cst_41 [2] : vector<4x8x12xf32> to vector<4x8xf32>
    %153 = vector.shape_cast %152 : vector<4x8xf32> to vector<4x8x1xf32>
    %154 = vector.broadcast %153 : vector<4x8x1xf32> to vector<4x8x12xf32>
    %155 = arith.subf %151, %154 : vector<4x8x12xf32>
    %156 = math.exp %155 : vector<4x8x12xf32>
    %cst_42 = arith.constant dense<0.000000e+00> : vector<4x8xf32>
    %157 = vector.multi_reduction <add>, %156, %cst_42 [2] : vector<4x8x12xf32> to vector<4x8xf32>
    %158 = vector.shape_cast %157 : vector<4x8xf32> to vector<4x8x1xf32>
    %159 = tpu.reciprocal %158 {approx = true} : vector<4x8x1xf32> -> vector<4x8x1xf32>
    %160 = vector.broadcast %159 : vector<4x8x1xf32> to vector<4x8x12xf32>
    %161 = arith.mulf %156, %160 : vector<4x8x12xf32>
    %162 = arith.truncf %161 : vector<4x8x12xf32> to vector<4x8x12xbf16>
    %163 = arith.truncf %146 : vector<4x12x8xf32> to vector<4x12x8xbf16>
    "tpu.trace_start"() <{level = 10 : i32, message = "hqk,hke->hqe"}> : () -> ()
    %cst_43 = arith.constant dense<0.000000e+00> : vector<4x8x8xf32>
    %164 = tpu.matmul %162, %163, %cst_43 {dimension_numbers = #tpu.dot_dimension_numbers<[2], [1], [1], [2], [0, 0, 0, 1, 1, 2], [0], [0]>} : vector<4x8x12xbf16>, vector<4x12x8xbf16>, vector<4x8x8xf32> -> vector<4x8x8xf32>
    "tpu.trace_stop"() : () -> ()
    %165 = arith.truncf %164 : vector<4x8x8xf32> to vector<4x8x8xbf16>
    "tpu.trace_start"() <{level = 10 : i32, message = "hqe,hed->hqd"}> : () -> ()
    %cst_44 = arith.constant dense<0.000000e+00> : vector<4x8x32xf32>
    %166 = tpu.matmul %165, %140, %cst_44 {dimension_numbers = #tpu.dot_dimension_numbers<[2], [1], [1], [2], [0, 0, 0, 1, 1, 2], [0], [0]>} : vector<4x8x8xbf16>, vector<4x8x32xbf16>, vector<4x8x32xf32> -> vector<4x8x32xf32>
    "tpu.trace_stop"() : () -> ()
    %cst_45 = arith.constant dense<0.000000e+00> : vector<8x32xf32>
    %167 = vector.multi_reduction <add>, %166, %cst_45 [0] : vector<4x8x32xf32> to vector<8x32xf32>
    %168 = vector.shape_cast %29 : vector<32xf32> to vector<1x32xf32>
    %169 = vector.broadcast %168 : vector<1x32xf32> to vector<8x32xf32>
    %170 = arith.addf %167, %169 : vector<8x32xf32>
    %171 = arith.addf %122, %170 : vector<8x32xf32>
    %cst_46 = arith.constant dense<0.000000e+00> : vector<8xf32>
    %172 = vector.multi_reduction <add>, %171, %cst_46 [1] : vector<8x32xf32> to vector<8xf32>
    %173 = vector.shape_cast %172 : vector<8xf32> to vector<8x1xf32>
    %cst_47 = arith.constant 3.200000e+01 : f32
    %174 = vector.broadcast %cst_47 : f32 to vector<8x1xf32>
    %175 = arith.divf %173, %174 : vector<8x1xf32>
    %176 = vector.broadcast %175 : vector<8x1xf32> to vector<8x32xf32>
    %177 = arith.subf %171, %176 : vector<8x32xf32>
    %178 = arith.mulf %177, %177 : vector<8x32xf32>
    %cst_48 = arith.constant dense<0.000000e+00> : vector<8xf32>
    %179 = vector.multi_reduction <add>, %178, %cst_48 [1] : vector<8x32xf32> to vector<8xf32>
    %180 = vector.shape_cast %179 : vector<8xf32> to vector<8x1xf32>
    %cst_49 = arith.constant 3.200000e+01 : f32
    %181 = vector.broadcast %cst_49 : f32 to vector<8x1xf32>
    %182 = arith.divf %180, %181 : vector<8x1xf32>
    %183 = vector.broadcast %175 : vector<8x1xf32> to vector<8x32xf32>
    %184 = arith.subf %171, %183 : vector<8x32xf32>
    %cst_50 = arith.constant 9.99999974E-6 : f32
    %185 = vector.broadcast %cst_50 : f32 to vector<8x1xf32>
    %186 = arith.addf %182, %185 : vector<8x1xf32>
    %187 = math.rsqrt %186 : vector<8x1xf32>
    %188 = vector.broadcast %187 : vector<8x1xf32> to vector<8x32xf32>
    %189 = arith.mulf %184, %188 : vector<8x32xf32>
    %190 = vector.shape_cast %31 : vector<32xf32> to vector<1x32xf32>
    %191 = vector.broadcast %190 : vector<1x32xf32> to vector<8x32xf32>
    %192 = arith.mulf %189, %191 : vector<8x32xf32>
    %193 = vector.shape_cast %33 : vector<32xf32> to vector<1x32xf32>
    %194 = vector.broadcast %193 : vector<1x32xf32> to vector<8x32xf32>
    %195 = arith.addf %192, %194 : vector<8x32xf32>
    %196 = arith.truncf %195 : vector<8x32xf32> to vector<8x32xbf16>
    %c0_51 = arith.constant 0 : index
    %c0_52 = arith.constant 0 : index
    %197 = vector.load %arg10[%c0_51, %c0_52] : memref<32x64xbf16, #tpu.memory_space<vmem>>, vector<32x64xbf16>
    %cst_53 = arith.constant dense<0.000000e+00> : vector<8x64xf32>
    %198 = tpu.matmul %196, %197, %cst_53 {dimension_numbers = #tpu.dot_dimension_numbers<[1], [0], [0], [1], [0, 0, 1, 1], [], []>} : vector<8x32xbf16>, vector<32x64xbf16>, vector<8x64xf32> -> vector<8x64xf32>
    %c0_54 = arith.constant 0 : index
    %c0_55 = arith.constant 0 : index
    %199 = vector.load %arg13[%c0_54, %c0_55] : memref<1x64xf32, #tpu.memory_space<vmem>>, vector<1x64xf32>
    %200 = vector.broadcast %199 : vector<1x64xf32> to vector<8x64xf32>
    %201 = arith.addf %198, %200 : vector<8x64xf32>
    %cst_56 = arith.constant 0.000000e+00 : f32
    %202 = vector.broadcast %cst_56 : f32 to vector<8x64xf32>
    %203 = arith.maximumf %201, %202 : vector<8x64xf32>
    %204 = arith.truncf %203 : vector<8x64xf32> to vector<8x64xbf16>
    %c0_57 = arith.constant 0 : index
    %c0_58 = arith.constant 0 : index
    %205 = vector.load %arg11[%c0_57, %c0_58] : memref<64x32xbf16, #tpu.memory_space<vmem>>, vector<64x32xbf16>
    %cst_59 = arith.constant dense<0.000000e+00> : vector<8x32xf32>
    %206 = tpu.matmul %204, %205, %cst_59 {dimension_numbers = #tpu.dot_dimension_numbers<[1], [0], [0], [1], [0, 0, 1, 1], [], []>} : vector<8x64xbf16>, vector<64x32xbf16>, vector<8x32xf32> -> vector<8x32xf32>
    %207 = vector.shape_cast %35 : vector<32xf32> to vector<1x32xf32>
    %208 = vector.broadcast %207 : vector<1x32xf32> to vector<8x32xf32>
    %209 = arith.addf %206, %208 : vector<8x32xf32>
    %210 = arith.addf %195, %209 : vector<8x32xf32>
    %cst_60 = arith.constant dense<0.000000e+00> : vector<8xf32>
    %211 = vector.multi_reduction <add>, %210, %cst_60 [1] : vector<8x32xf32> to vector<8xf32>
    %212 = vector.shape_cast %211 : vector<8xf32> to vector<8x1xf32>
    %cst_61 = arith.constant 3.200000e+01 : f32
    %213 = vector.broadcast %cst_61 : f32 to vector<8x1xf32>
    %214 = arith.divf %212, %213 : vector<8x1xf32>
    %215 = vector.broadcast %214 : vector<8x1xf32> to vector<8x32xf32>
    %216 = arith.subf %210, %215 : vector<8x32xf32>
    %217 = arith.mulf %216, %216 : vector<8x32xf32>
    %cst_62 = arith.constant dense<0.000000e+00> : vector<8xf32>
    %218 = vector.multi_reduction <add>, %217, %cst_62 [1] : vector<8x32xf32> to vector<8xf32>
    %219 = vector.shape_cast %218 : vector<8xf32> to vector<8x1xf32>
    %cst_63 = arith.constant 3.200000e+01 : f32
    %220 = vector.broadcast %cst_63 : f32 to vector<8x1xf32>
    %221 = arith.divf %219, %220 : vector<8x1xf32>
    %222 = vector.broadcast %214 : vector<8x1xf32> to vector<8x32xf32>
    %223 = arith.subf %210, %222 : vector<8x32xf32>
    %cst_64 = arith.constant 9.99999974E-6 : f32
    %224 = vector.broadcast %cst_64 : f32 to vector<8x1xf32>
    %225 = arith.addf %221, %224 : vector<8x1xf32>
    %226 = math.rsqrt %225 : vector<8x1xf32>
    %227 = vector.broadcast %226 : vector<8x1xf32> to vector<8x32xf32>
    %228 = arith.mulf %223, %227 : vector<8x32xf32>
    %229 = vector.shape_cast %37 : vector<32xf32> to vector<1x32xf32>
    %230 = vector.broadcast %229 : vector<1x32xf32> to vector<8x32xf32>
    %231 = arith.mulf %228, %230 : vector<8x32xf32>
    %232 = vector.shape_cast %39 : vector<32xf32> to vector<1x32xf32>
    %233 = vector.broadcast %232 : vector<1x32xf32> to vector<8x32xf32>
    %234 = arith.addf %231, %233 : vector<8x32xf32>
    %c0_65 = arith.constant 0 : index
    %c0_66 = arith.constant 0 : index
    %c0_67 = arith.constant 0 : index
    %235 = vector.load %arg14[%c0_65, %c0_66, %c0_67] : memref<1x8x32xf32, #tpu.memory_space<vmem>>, vector<1x8x32xf32>
    %236 = vector.shape_cast %235 : vector<1x8x32xf32> to vector<8x32xf32>
    %237 = vector.shape_cast %234 : vector<8x32xf32> to vector<1x8x32xf32>
    tpu.vector_store %arg14[%c0_65, %c0_66, %c0_67], %237 {strides = array<i32>} : memref<1x8x32xf32, #tpu.memory_space<vmem>>, vector<1x8x32xf32>,
    return
  }
  func.func @transform_0(%arg0: i32, %arg1: i32) -> (i32, i32, i32) {
    %c0_i32 = arith.constant 0 : i32
    %c0_i32_0 = arith.constant 0 : i32
    %c0_i32_1 = arith.constant 0 : i32
    return %arg0, %c0_i32, %c0_i32_0 : i32, i32, i32
  }
  func.func @transform_1(%arg0: i32, %arg1: i32) -> (i32, i32, i32) {
    %c0_i32 = arith.constant 0 : i32
    %c0_i32_0 = arith.constant 0 : i32
    %c0_i32_1 = arith.constant 0 : i32
    return %arg0, %c0_i32, %c0_i32_0 : i32, i32, i32
  }
  func.func @transform_2(%arg0: i32, %arg1: i32) -> (i32, i32) {
    %c0_i32 = arith.constant 0 : i32
    %c0_i32_0 = arith.constant 0 : i32
    %c0_i32_1 = arith.constant 0 : i32
    return %c0_i32, %c0_i32_0 : i32, i32
  }
  func.func @transform_3(%arg0: i32, %arg1: i32) -> (i32, i32) {
    %c0_i32 = arith.constant 0 : i32
    %c0_i32_0 = arith.constant 0 : i32
    %c0_i32_1 = arith.constant 0 : i32
    return %c0_i32, %c0_i32_0 : i32, i32
  }
  func.func @transform_4(%arg0: i32, %arg1: i32) -> (i32, i32, i32) {
    %c0_i32 = arith.constant 0 : i32
    %c0_i32_0 = arith.constant 0 : i32
    %c0_i32_1 = arith.constant 0 : i32
    %c0_i32_2 = arith.constant 0 : i32
    return %c0_i32, %c0_i32_0, %c0_i32_1 : i32, i32, i32
  }
  func.func @transform_5(%arg0: i32, %arg1: i32) -> (i32, i32) {
    %c0_i32 = arith.constant 0 : i32
    %c0_i32_0 = arith.constant 0 : i32
    %c0_i32_1 = arith.constant 0 : i32
    return %c0_i32, %c0_i32_0 : i32, i32
  }
  func.func @transform_6(%arg0: i32, %arg1: i32) -> (i32, i32) {
    %c0_i32 = arith.constant 0 : i32
    %c0_i32_0 = arith.constant 0 : i32
    %c0_i32_1 = arith.constant 0 : i32
    return %c0_i32, %c0_i32_0 : i32, i32
  }
  func.func @transform_7(%arg0: i32, %arg1: i32) -> (i32, i32, i32) {
    %c0_i32 = arith.constant 0 : i32
    %c0_i32_0 = arith.constant 0 : i32
    %c0_i32_1 = arith.constant 0 : i32
    %c0_i32_2 = arith.constant 0 : i32
    return %c0_i32, %c0_i32_0, %c0_i32_1 : i32, i32, i32
  }
  func.func @transform_8(%arg0: i32, %arg1: i32) -> (i32, i32) {
    %c0_i32 = arith.constant 0 : i32
    %c0_i32_0 = arith.constant 0 : i32
    %c0_i32_1 = arith.constant 0 : i32
    return %c0_i32, %c0_i32_0 : i32, i32
  }
  func.func @transform_9(%arg0: i32, %arg1: i32) -> (i32, i32) {
    %c0_i32 = arith.constant 0 : i32
    %c0_i32_0 = arith.constant 0 : i32
    %c0_i32_1 = arith.constant 0 : i32
    return %c0_i32, %c0_i32_0 : i32, i32
  }
  func.func @transform_10(%arg0: i32, %arg1: i32) -> (i32, i32) {
    %c0_i32 = arith.constant 0 : i32
    %c0_i32_0 = arith.constant 0 : i32
    %c0_i32_1 = arith.constant 0 : i32
    return %c0_i32, %c0_i32_0 : i32, i32
  }
  func.func @transform_11(%arg0: i32, %arg1: i32) -> (i32, i32) {
    %c0_i32 = arith.constant 0 : i32
    %c0_i32_0 = arith.constant 0 : i32
    %c0_i32_1 = arith.constant 0 : i32
    return %c0_i32, %c0_i32_0 : i32, i32
  }
  func.func @transform_12(%arg0: i32, %arg1: i32) -> (i32, i32, i32) {
    %c0_i32 = arith.constant 0 : i32
    %c0_i32_0 = arith.constant 0 : i32
    return %arg0, %arg1, %c0_i32 : i32, i32, i32
  }
}

</mosaic_0001>

<bundles_post_ra>
// kernel: tpu_custom_call.1
= control target key start
LH: loop header
LB: loop body
LE: loop exit
PB: predicated region body
PF: predicated region fallthrough
CT: control target
= control target key end

     0   :  { %s4942_s0 = inlined_call_operand.vmem [shape: f32[2,8,32], index: 0, kind: input, shape index: {}]   ;;  %s4943_s1 = inlined_call_operand.vmem [shape: f32[2,12,32], index: 1, kind: input, shape index: {}]   ;;  %s4944_s2 = inlined_call_operand.vmem [shape: bf16[32,32], index: 2, kind: input, shape index: {}]   ;;  %s4945_s3 = inlined_call_operand.vmem [shape: bf16[32,64], index: 3, kind: input, shape index: {}]   ;;  %s4946_s4 = inlined_call_operand.vmem [shape: bf16[4,8,32], index: 4, kind: input, shape index: {}]   ;;  %s4947_s5 = inlined_call_operand.vmem [shape: bf16[32,32], index: 5, kind: input, shape index: {}]   ;;  %s4948_s6 = inlined_call_operand.vmem [shape: bf16[32,64], index: 6, kind: input, shape index: {}]   ;;  %s4949_s7 = inlined_call_operand.hbm [shape: bf16[4,8,32], index: 7, kind: input, shape index: {}]   ;;  %s4950_s8 = inlined_call_operand.hbm [shape: bf16[32,64], index: 8, kind: input, shape index: {}]   ;;  %s4951_s9 = inlined_call_operand.vmem [shape: bf16[64,32], index: 9, kind: input, shape index: {}]   ;;  %s4952_s10 = inlined_call_operand.hbm [shape: f32[16,32], index: 10, kind: input, shape index: {}]   ;;  %s4953_s11 = inlined_call_operand.vmem [shape: f32[1,64], index: 11, kind: input, shape index: {}]   ;;  %s4954_s12 = inlined_call_operand.hbm [shape: f32[2,8,32], index: 12, kind: output, shape index: {}]  }
   0x1   :  { %4960 = sst [smem:[#allocation16_spill]] %s4950_s8 }
   0x2   :  { %17 = vsyncpa [#allocation3], 0 }
   0x3   :  { %18 = vsyncpa [#allocation6], 0 }
   0x4   :  { %19 = vsyncpa [#allocation4], 0 }
   0x5   :  { %21 = vsyncpa [#allocation4 + $0x1], 0  ;;  %s4215_s21 = smov 0   ;;  %s4217_s22 = smov 0  }
   0x6   :  { %s4219_s23 = smov 0   ;;  %s4221_s24 = smov 0  }
   0x7   :  { %s4223_s25 = smov 0   ;;  %s4225_s26 = smov 0  }
   0x8 LB: > { %4961 = sst [smem:[#allocation12_spill]] %s4119_s23  ;;  %s3475_s27 = sadd.s32 4294967295, %s4131_s26   ;;  %s4131_s26 = sphi %s4225_s26, %s27_s26   ;;  %s4127_s25 = sphi %s4223_s25, %s4976_s25   ;;  %s4123_s24 = sphi %s4221_s24, %s4975_s24   ;;  %s4119_s23 = sphi %s4219_s23, %s4974_s23   ;;  %s4115_s22 = sphi %s4217_s22, %s4978_s22   ;;  %s4111_s21 = sphi %s4215_s21, %s4977_s21  }
   0x9   : > { %4962 = sst [smem:[#allocation13_spill]] %s4127_s25  ;;  %s3476_s28 = sadd.s32 4294967294, %s4131_s26  }
   0xa   : > { %s39_s29 = sadd.s32 1, %s4127_s25  ;;  %s310_s30 = sadd.s32 1, %s4119_s23 }
   0xb   : > { %p41_p0 = scmp.ge.s32.totalorder %s39_s29, 2  ;;  %p320_p1 = scmp.ne.s32.totalorder %s4119_s23, %s4115_s22 }
   0xc   : > { %p321_p2 = scmp.eq.s32.totalorder %s3475_s27, 1  ;;  %p326_p3 = scmp.ne.s32.totalorder %s4115_s22, %s4111_s21 }
   0xd   : > { %s4980_s29 = smov (%p41_p0, %s39_s29), 0  ;;  %p327_p5 = scmp.eq.s32.totalorder %s3476_s28, 1 }
   0xe   : > { %4963 = sst [smem:[#allocation14_spill]] %s4980_s29  ;;  %p4255_p4 = por %p321_p2, %p320_p1 }
   0xf   : > { %s305_s14 = ssub.s32 %s4127_s25, %s4980_s29  ;;  %p3477_p6 = scmp.ge.s32.totalorder %s4131_s26, 1 }
  0x10   : > { %p308_p7 = scmp.eq.s32.totalorder %s305_s14, 0  ;;  %p4262_p8 = por %p327_p5, %p326_p3 }
  0x11   : > { %p334_p9 = scmp.lt.s32.totalorder %s4131_s26, 3  ;;  %p4274_p11 = scmp.eq.s32.totalorder %s3475_s27, 0 }
  0x12   : > { %s4965_s15 = scalar_select %p4262_p8, 1, 0 }
  0x13   : > { %s4268_s16 = scalar_select %p308_p7, %s4119_s23, %s310_s30  }
  0x14   : > { %p4270_p10 = pnand %p3477_p6, %p334_p9  ;;  %s4133_s19 = smov [#allocation5]  }
  0x15   : > { %4966 = sst [smem:[#allocation15_spill]] %s4268_s16  ;;  %s374_s20 = sshll.u32 %s4133_s19, 4  ;;  %s375_s20 = int_to_ptr.vmem [resolvable:$true] %s374_s20 }
  0x16   : > { %p3832_p12 = pneg %p4270_p10  ;;  %s4134_s30 = smov [#allocation2]  }
  0x17   : > { %s361_s14 = sshll.u32 %s4134_s30, 4  ;;  %s3980_s27 = scalar_lea.vmem %s375_s20, 256  ;;  %s362_s14 = int_to_ptr.vmem [resolvable:$true] %s361_s14 }
  0x18   : > { %p4282_p13 = pnand %p4274_p11, %p3832_p12  ;;  %p3981_p1 = scmp.ne.s32.totalorder %s375_s20, %s3980_s27 }
  0x19   : > { %p3988_p5 = scmp.lt.s32.totalorder %s375_s20, %s375_s20  ;;  %p3989_p6 = scmp.lt.s32.totalorder %s3980_s27, %s3980_s27 }
  0x1a   : > { %p3971_p0 = pneg %p4282_p13 }
  0x1b   : > { %p3990_p7 = por %p3989_p6, %p3988_p5 }
  0x1c   : > { %p3983_p2 = pnand %p3981_p1, %p3971_p0 }
  0x1e   : > { %p3984_p3 = pneg %p3983_p2 }
  0x20   : > { %p3991_p9 = pnand %p3990_p7, %p3984_p3 }
  0x22   : > { %3994 = shalt.err (!%p3991_p9)
}
  0x23   : > { %s4135_s19 = smov 64   ;;  %s4136_s29 = smov 4  }
  0x24   : > { %s4970_s8 = sld [smem:[#allocation16_spill]]  ;;  %s4006_s16 = scalar_lea.vmem %s362_s14, 256 }
  0x25   : > { %p4007_p12 = scmp.ne.s32.totalorder %s362_s14, %s4006_s16  ;;  %p4014_p8 = scmp.lt.s32.totalorder %s362_s14, %s362_s14 }
  0x26   : > { %p4015_p5 = scmp.lt.s32.totalorder %s4006_s16, %s4006_s16 }
  0x27   : > { %p4009_p1 = pnand %p4007_p12, %p3971_p0 }
  0x28   : > { %p4016_p3 = por %p4015_p5, %p4014_p8 }
  0x29   : > { %p4010_p2 = pneg %p4009_p1 }
  0x2a   : > { %3838 = dma.hbm_to_vmem [thread:$0]  (!%p4282_p13), %s4970_s8, 256, %s375_s20, [#allocation6], %s4135_s19, %s4135_s19, %s4136_s29  }
  0x2b   : > { %p4017_p6 = pnand %p4016_p3, %p4010_p2 }
  0x2d   : > { %4020 = shalt.err (!%p4017_p6)
}
  0x2e   : > { %3835 = dma.hbm_to_vmem [thread:$0]  (!%p4282_p13), %s4949_s7, 256, %s362_s14, [#allocation3], %s4135_s19, %s4135_s19, %s4136_s29  }
  0x2f   : > { %s4137_s25 = smov [#allocation7]  }
  0x30   : > { %s390_s20 = sshll.u32 %s4137_s25, 4  ;;  %s391_s20 = int_to_ptr.vmem [resolvable:$true] %s390_s20 }
  0x31   : > { %s4032_s30 = scalar_lea.vmem %s391_s20, 256  ;;  %p4040_p1 = scmp.lt.s32.totalorder %s391_s20, %s391_s20 }
  0x32   : > { %p4033_p7 = scmp.ne.s32.totalorder %s391_s20, %s4032_s30  ;;  %p4041_p8 = scmp.lt.s32.totalorder %s4032_s30, %s4032_s30 }
  0x34   : > { %p4035_p9 = pnand %p4033_p7, %p3971_p0  ;;  %p4042_p2 = por %p4041_p8, %p4040_p1 }
  0x36   : > { %p4036_p12 = pneg %p4035_p9 }
  0x38   : > { %p4043_p5 = pnand %p4042_p2, %p4036_p12 }
  0x3a   : > { %4046 = shalt.err (!%p4043_p5)
}
  0x3b   : > { %s4138_s16 = smov 128   ;;  %s4139_s8 = smov 8  }
  0x3c   : > { %3841 = dma.hbm_to_vmem [thread:$0]  (!%p4282_p13), %s4952_s10, 256, %s391_s20, [#allocation6], %s4138_s16, %s4138_s16, %s4139_s8  }
  0x3d   : > { %424 = sbr.rel (%p4270_p10) target bundleno = 4011 (0xfab), region = 68 }
  0x42   : > { %4098 = dma.done.wait (%p4274_p11), [#allocation3], 256  }
  0x43   : > { %4100 = vsyncadd (%p4274_p11), [#allocation3], 4294967040 }
  0x44   : > { %4102 = dma.done.wait (%p4274_p11), [#allocation6], 512  }
  0x45   : > { %4104 = vsyncadd (%p4274_p11), [#allocation6], 4294966784  ;;  %p478_p0 = scmp.lt.s32.totalorder %s4123_s24, 1  ;;  %v4140_v0 = vmov 0.0   ;;  %vm4141_vm0 = vmmov 0   ;;  %v3917_v1 = vld [vmem:[%s4945_s3 + $0x8] sm:$0xff]   ;;  %v501_v7 = vlaneseq }
  0x46   : > { %3630 = vmatprep.subr.bf16.mxu1 %v4140_v0  ;;  %3622 = vmatprep.subr.bf16.mxu0 %v4140_v0  ;;  %v3918_v2 = vld [vmem:[%s4944_s2 + $0x8] sm:$0xff]   ;;  %v3919_v3 = vld [vmem:[%s4945_s3] sm:$0xff]   ;;  %vm517_vm1 = vcmask 261120   ;;  %s4143_s18 = smov 120   ;;  %s4144_s28 = smov 112   ;;  %vm1101_vm2 = vcmask 64512  }
  0x47   : > { %3634 = vmatprep.mubr.msk.bf16.mxu1 %vm4141_vm0, %v4140_v0  ;;  %s4328_s8 = scalar_select %p478_p0, %s4123_s24, 1  ;;  %3626 = vmatprep.mubr.msk.bf16.mxu0 %vm4141_vm0, %v4140_v0  ;;  %v3920_v4 = vld [vmem:[%s4944_s2] sm:$0xff]   ;;  %v4363_v8 = vshrl.u32 %v501_v7, 7  ;;  %v4146_v26 = vmov 1983009808   ;;  %vm1351_vm4 = vcmask 1043456  }
  0x48   : > { %3631 = vmatpush3.bf16.msra.mxu1 %v3917_v1  ;;  %3623 = vmatpush3.bf16.msra.mxu0 %v3918_v2  ;;  %v4366_v10 = vld [vmem:[#allocation7] sm:$0xff]  ;;  %s4145_s14 = smov 32   ;;  %v659_v27 = vunpack.c.l.s4 %v4146_v26  ;;  %v4147_v28 = vmov 1934713408   ;;  %s4958_s19 = smov 96   ;;  %vm2711_vm5 = vcmask 97280  }
  0x49   : > { %s3487_s17 = sshll.u32 %s4328_s8, 3  ;;  %3632 = vmatprep.subr.bf16.mxu1 %v4140_v0  ;;  %3624 = vmatprep.subr.bf16.mxu0 %v4140_v0  ;;  %v623_v9 = vsub.s32 1, %v4363_v8  ;;  %v503_v11 = vsub.s32 0, %v4363_v8  ;;  %v628_v24 = vsub.s32 2, %v4363_v8  ;;  %v691_v29 = vunpack.c.l.s4 %v4147_v28  ;;  %s3553_s25 = sshll.u32 %s4328_s8, 4 }
  0x4a   : > { %s481_s20 = scalar_lea.vmem %s4942_s0, %s3487_s17  ;;  %s4142_s17 = smov 104   ;;  %v660_v30 = vunpack.c.0.s8 %v659_v27  ;;  %vm2767_vm6 = vcmask 1045504   ;;  %vm3278_vm7 = vcmask 523264  }
  0x4b   : > { %v4350_v5 = vld [vmem:[%s481_s20] sm:$0xff]  ;;  %v624_v12 = vrot.slane %v4366_v10, %v623_v9  ;;  %v504_v13 = vrot.slane %v4366_v10, %v503_v11  ;;  %v629_v25 = vrot.slane %v4366_v10, %v628_v24  ;;  %v692_v33 = vunpack.c.0.s8 %v691_v29  ;;  %s486_s16 = scalar_lea.vmem %s4943_s1, %s3553_s25  ;;  %s475_s25 = sand.u32 1, %s4115_s22  }
  0x4c   : > { %v561_v6 = vpack.c.bf16 %v4350_v5, %v4350_v5  ;;  %3633 = vmatpush3.bf16.msra.mxu1 %v3919_v3  ;;  %3625 = vmatpush3.bf16.msra.mxu0 %v3920_v4  ;;  %v4390_v34 = vsub.s32 %v660_v30, %v4363_v8  ;;  %s3486_s20 = sshll.u32 %s475_s25, 3  ;;  %s3348_s23 = scalar_lea.sflag [#allocation4], %s475_s25 }
  0x4d   : > { %3644 = vmatprep.subr.bf16.mxu1 %v4140_v0  ;;  %3638 = vmatprep.subr.bf16.mxu0 %v4140_v0  ;;  %v4393_v41 = vsub.s32 %v692_v33, %v4363_v8  ;;  %s4149_s27 = smov [#allocation8]  }
  0x4e   : > { %s4051_s8 = sshll.u32 %s4149_s27, 4  ;;  %s4052_s8 = int_to_ptr.vmem [resolvable:$false] %s4051_s8 }
  0x4f   : > { %3635 = vmatmul.mubr.msk.bf16.vlgmr.msra.gmra.mxu1 %vm517_vm1, %v561_v6  ;;  %3627 = vmatmul.mubr.msk.bf16.vlgmr.msra.gmra.mxu0 %vm517_vm1, %v561_v6 }
  0x50   : > { %3646 = vmatprep.mubr.msk.bf16.mxu1 %vm4141_vm0, %v4140_v0  ;;  %3640 = vmatprep.mubr.msk.bf16.mxu0 %vm4141_vm0, %v4140_v0 }
 0x10f   : > { %v4375_v14 = vpop.f32.mrf.mxu1  ;;  %v555_v16 = vpop.f32.mrf.mxu0 }
 0x110   : > { %v625_v15 = vadd.f32 %v624_v12, %v4375_v14  ;;  %v556_v18 = vadd.f32 %v555_v16, %v504_v13 }
 0x111   : > { %v3636_v17 = vpop.f32.mrf.mxu1  ;;  %v3628_v19 = vpop.f32.mrf.mxu0 }
 0x112   : > { %799 = vrot.lane.b32.xlu1 %v625_v15, %s4142_s17  ;;  %793 = vrot.lane.b32.xlu0 %v625_v15, %s4143_s18 }
 0x113   : > { %v618_v20 = vpop.f32.mrf.mxu1  ;;  %v558_v21 = vpop.f32.mrf.mxu0 }
 0x115   : > { %v3637_v22 = vpop.f32.mrf.mxu1  ;;  %v3629_v23 = vpop.f32.mrf.mxu0 }
 0x116   : > { %647 = vrot.lane.b32.xlu1 %v556_v18, %s4143_s18  ;;  %796 = vrot.lane.b32.xlu0 %v625_v15, %s4144_s28 }
 0x11a   : > { %653 = vrot.lane.b32.xlu1 %v556_v18, %s4142_s17  ;;  %650 = vrot.lane.b32.xlu0 %v556_v18, %s4144_s28 }
 0x11e   : > { %631 = vrot.lane.b32.xlu0 %v629_v25, %s4145_s14 }
 0x184   : > { %v800_v31 = vpop.permute.xlu1 %799  ;;  %v794_v32 = vpop.permute.xlu0 %793 }
 0x185   : > { %v818_v35 = vcombine.low %v794_v32, %v800_v31  ;;  %v819_v36 = vcombine.high %v794_v32, %v800_v31 }
 0x187   : > { %v826_v42 = vrot.slane %v818_v35, %v4390_v34  ;;  %v833_v43 = vrot.slane %v819_v36, %v4390_v34 }
 0x188   : > { %v648_v37 = vpop.permute.xlu1 %647  ;;  %v797_v38 = vpop.permute.xlu0 %796 }
 0x189   : > { %v802_v39 = vcombine.low %v625_v15, %v797_v38  ;;  %v803_v40 = vcombine.high %v625_v15, %v797_v38 }
 0x18b   : > { %v810_v44 = vrot.slane %v802_v39, %v4390_v34  ;;  %v817_v45 = vrot.slane %v803_v40, %v4390_v34 }
 0x18c   : > { %v654_v46 = vpop.permute.xlu1 %653  ;;  %v651_v47 = vpop.permute.xlu0 %650 }
 0x18d   : > { %v834_v48 = vcombine.low %v810_v44, %v826_v42  ;;  %v835_v49 = vcombine.high %v810_v44, %v826_v42  ;;  %v850_v50 = vcombine.low %v817_v45, %v833_v43  ;;  %v851_v51 = vcombine.high %v817_v45, %v833_v43 }
 0x18e   : > { %v672_v52 = vcombine.low %v648_v37, %v654_v46  ;;  %v673_v53 = vcombine.high %v648_v37, %v654_v46  ;;  %v656_v54 = vcombine.low %v556_v18, %v651_v47  ;;  %v657_v55 = vcombine.high %v556_v18, %v651_v47 }
 0x18f   : > { %v842_v56 = vrot.slane %v834_v48, %v4393_v41  ;;  %v849_v57 = vrot.slane %v835_v49, %v4393_v41  ;;  %v858_v58 = vrot.slane %v850_v50, %v4393_v41  ;;  %v865_v59 = vrot.slane %v851_v51, %v4393_v41 }
 0x190   : > { %v680_v60 = vrot.slane %v672_v52, %v4390_v34  ;;  %v687_v61 = vrot.slane %v673_v53, %v4390_v34  ;;  %v664_v62 = vrot.slane %v656_v54, %v4390_v34  ;;  %v671_v63 = vrot.slane %v657_v55, %v4390_v34  ;;  %v632_v16 = vpop.permute.xlu0 %631 }
 0x191   : > { %v870_v1 = vcombine.low %v842_v56, %v849_v57  ;;  %v3498_v2 = vcombine.high %v842_v56, %v849_v57  ;;  %v886_v3 = vcombine.low %v858_v58, %v865_v59  ;;  %v3499_v4 = vcombine.high %v858_v58, %v865_v59 }
 0x192   : > { %v688_v6 = vcombine.low %v664_v62, %v680_v60  ;;  %v689_v12 = vcombine.high %v664_v62, %v680_v60  ;;  %v704_v13 = vcombine.low %v671_v63, %v687_v61  ;;  %v705_v15 = vcombine.high %v671_v63, %v687_v61 }
 0x193   : > { %v877_v17 = vrot.slane %v870_v1, %v4390_v34  ;;  %v885_v18 = vrot.slane %v3498_v2, %v4390_v34  ;;  %v893_v19 = vrot.slane %v886_v3, %v4390_v34  ;;  %v901_v20 = vrot.slane %v3499_v4, %v4390_v34 }
 0x194   : > { %v696_v21 = vrot.slane %v688_v6, %v4393_v41  ;;  %v703_v22 = vrot.slane %v689_v12, %v4393_v41  ;;  %v712_v23 = vrot.slane %v704_v13, %v4393_v41  ;;  %v719_v25 = vrot.slane %v705_v15, %v4393_v41 }
 0x195   : > { %v4416_v26 = vadd.f32 %v632_v16, %v4375_v14  ;;  %v902_v27 = vcombine.low %v877_v17, %v885_v18  ;;  %v918_v28 = vcombine.low %v893_v19, %v901_v20  ;;  %v903_v29 = vcombine.high %v877_v17, %v885_v18 }
 0x196   : > { %v724_v30 = vcombine.low %v696_v21, %v703_v22  ;;  %v3496_v31 = vcombine.high %v696_v21, %v703_v22  ;;  %v740_v32 = vcombine.low %v712_v23, %v719_v25  ;;  %v3497_v33 = vcombine.high %v712_v23, %v719_v25 }
 0x197   : > { %941 = vrot.lane.b32.xlu1 %v4416_v26, %s4144_s28  ;;  %939 = vrot.lane.b32.xlu0 %v4416_v26, %s4143_s18  ;;  %v910_v35 = vrot.slane %v902_v27, %v4393_v41  ;;  %v926_v36 = vrot.slane %v918_v28, %v4393_v41  ;;  %v917_v43 = vrot.slane %v903_v29, %v4393_v41  ;;  %v640_v16 = vand.u32 127, %v501_v7 }
 0x198   : > { %v731_v14 = vrot.slane %v724_v30, %v4390_v34  ;;  %v739_v37 = vrot.slane %v3496_v31, %v4390_v34  ;;  %v747_v38 = vrot.slane %v740_v32, %v4390_v34  ;;  %v755_v39 = vrot.slane %v3497_v33, %v4390_v34 }
 0x199   : > { %v934_v40 = vcombine.low %v910_v35, %v926_v36  ;;  %v935_v42 = vcombine.high %v910_v35, %v926_v36  ;;  %v919_v44 = vcombine.high %v893_v19, %v901_v20  ;;  %vm645_vm3 = vcmp.gt.s32.totalorder %v640_v16, %v4363_v8 }
 0x19a   : > { %v756_v45 = vcombine.low %v731_v14, %v739_v37  ;;  %v772_v46 = vcombine.low %v747_v38, %v755_v39  ;;  %v757_v56 = vcombine.high %v731_v14, %v739_v37  ;;  %v773_v57 = vcombine.high %v747_v38, %v755_v39 }
 0x19b   : > { %943 = vrot.lane.b32.xlu1 %v4416_v26, %s4142_s17  ;;  %v1097_v47 = vpack.c.bf16 %v934_v40, %v934_v40  ;;  %v1098_v48 = vpack.c.bf16 %v935_v42, %v935_v42  ;;  %v933_v49 = vrot.slane %v919_v44, %v4393_v41 }
 0x19c   : > { %v764_v50 = vrot.slane %v756_v45, %v4393_v41  ;;  %v780_v51 = vrot.slane %v772_v46, %v4393_v41  ;;  %v771_v1 = vrot.slane %v757_v56, %v4393_v41  ;;  %v787_v2 = vrot.slane %v773_v57, %v4393_v41 }
 0x19d   : > { %v1106_v52 = vsel %vm1101_vm2, %v1097_v47, 0  ;;  %v1152_v53 = vsel %vm1101_vm2, %v1098_v48, 0  ;;  %v936_v54 = vcombine.low %v917_v43, %v933_v49  ;;  %v937_v55 = vcombine.high %v917_v43, %v933_v49 }
 0x19e   : > { %3639 = vmatpush3.bf16.xpose.msra.mxu0 %v1106_v52  ;;  %3645 = vmatpush3.bf16.xpose.msra.mxu1 %v1152_v53  ;;  %v788_v58 = vcombine.low %v764_v50, %v780_v51  ;;  %v789_v59 = vcombine.high %v764_v50, %v780_v51  ;;  %v790_v6 = vcombine.low %v771_v1, %v787_v2 }
 0x19f   : > { %3650 = vmatprep.subr.bf16.mxu0 %v4140_v0  ;;  %3656 = vmatprep.subr.bf16.mxu1 %v4140_v0  ;;  %v1099_v60 = vpack.c.bf16 %v936_v54, %v936_v54  ;;  %v1100_v61 = vpack.c.bf16 %v937_v55, %v937_v55  ;;  %v791_v12 = vcombine.high %v771_v1, %v787_v2 }
 0x1a0   : > { %v1093_v62 = vpack.c.bf16 %v788_v58, %v788_v58  ;;  %v1094_v63 = vpack.c.bf16 %v789_v59, %v789_v59  ;;  %v1095_v13 = vpack.c.bf16 %v790_v6, %v790_v6 }
 0x1a1   : > { %v1198_v3 = vsel %vm1101_vm2, %v1099_v60, 0  ;;  %v1244_v4 = vsel %vm1101_vm2, %v1100_v61, 0  ;;  %v1096_v15 = vpack.c.bf16 %v791_v12, %v791_v12 }
 0x1a5   : > { %3641 = vmatmul.mubr.msk.bf16.vlgmr.msra.gmra.mxu0 %vm1101_vm2, %v1093_v62  ;;  %3647 = vmatmul.mubr.msk.bf16.vlgmr.msra.gmra.mxu1 %vm1101_vm2, %v1094_v63 }
 0x1a6   : > { %3651 = vmatpush3.bf16.xpose.msra.mxu0 %v1198_v3  ;;  %3657 = vmatpush3.bf16.xpose.msra.mxu1 %v1244_v4 }
 0x1a7   : > { %3652 = vmatprep.mubr.msk.bf16.mxu0 %vm4141_vm0, %v4140_v0  ;;  %3658 = vmatprep.mubr.msk.bf16.mxu1 %vm4141_vm0, %v4140_v0 }
 0x1a8   : > { %3662 = vmatprep.subr.bf16.mxu0 %v4140_v0  ;;  %3668 = vmatprep.subr.bf16.mxu1 %v4140_v0 }
 0x1ad   : > { %3653 = vmatmul.mubr.msk.bf16.vlgmr.msra.gmra.mxu0 %vm1101_vm2, %v1095_v13  ;;  %3659 = vmatmul.mubr.msk.bf16.vlgmr.msra.gmra.mxu1 %vm1101_vm2, %v1096_v15 }
 0x1ae   : > { %3664 = vmatprep.mubr.msk.bf16.mxu0 %vm4141_vm0, %v4140_v0  ;;  %3670 = vmatprep.mubr.msk.bf16.mxu1 %vm4141_vm0, %v4140_v0 }
 0x209   : > { %v940_v47 = vpop.permute.xlu0 %939  ;;  %v942_v48 = vpop.permute.xlu1 %941 }
 0x20d   : > { %v944_v49 = vpop.permute.xlu1 %943 }
 0x265   : > { %v1142_v17 = vpop.f32.mrf.mxu0  ;;  %v1188_v18 = vpop.f32.mrf.mxu1 }
 0x266   : > { %v1286_v19 = vmul.f32 0.35355338, %v1142_v17  ;;  %v1287_v20 = vmul.f32 0.35355338, %v1188_v18 }
 0x267   : > { %v3642_v21 = vpop.f32.mrf.mxu0  ;;  %v3648_v22 = vpop.f32.mrf.mxu1 }
 0x268   : > { %v1292_v23 = vsel %vm645_vm3, -1e+30, %v1286_v19  ;;  %v1293_v25 = vsel %vm645_vm3, -1e+30, %v1287_v20 }
 0x269   : > { %v1145_v27 = vpop.f32.mrf.mxu0  ;;  %v1191_v28 = vpop.f32.mrf.mxu1  ;;  %v1296_v29 = vsel %vm1101_vm2, %v1292_v23, -inf  ;;  %v1299_v7 = vsel %vm1101_vm2, %v1293_v25, -inf }
 0x26a   : > { %1297 = vmax.xlane.f32.xlu1 %v1296_v29  ;;  %1300 = vmax.xlane.f32.xlu0 %v1299_v7 }
 0x26b   : > { %v3643_v30 = vpop.f32.mrf.mxu0  ;;  %v3649_v31 = vpop.f32.mrf.mxu1 }
 0x26d   : > { %v1234_v32 = vpop.f32.mrf.mxu0  ;;  %v1280_v33 = vpop.f32.mrf.mxu1 }
 0x26e   : > { %v1288_v35 = vmul.f32 0.35355338, %v1234_v32  ;;  %v1289_v36 = vmul.f32 0.35355338, %v1280_v33 }
 0x26f   : > { %v3654_v14 = vpop.f32.mrf.mxu0  ;;  %v3660_v37 = vpop.f32.mrf.mxu1 }
 0x270   : > { %v1294_v38 = vsel %vm645_vm3, -1e+30, %v1288_v35  ;;  %v1295_v39 = vsel %vm645_vm3, -1e+30, %v1289_v36 }
 0x271   : > { %v1237_v40 = vpop.f32.mrf.mxu0  ;;  %v1283_v42 = vpop.f32.mrf.mxu1  ;;  %v1302_v43 = vsel %vm1101_vm2, %v1294_v38, -inf  ;;  %v1305_v44 = vsel %vm1101_vm2, %v1295_v39, -inf }
 0x272   : > { %1303 = vmax.xlane.f32.xlu0 %v1302_v43  ;;  %1306 = vmax.xlane.f32.xlu1 %v1305_v44 }
 0x273   : > { %v3655_v45 = vpop.f32.mrf.mxu0  ;;  %v3661_v46 = vpop.f32.mrf.mxu1 }
 0x283   : > { %947 = vrot.lane.b32.xlu1 %v940_v47, %s4958_s19 }
 0x288   : > { %945 = vrot.lane.b32.xlu0 %v4416_v26, %s4958_s19 }
 0x2f3   : > { %v1298_v50 = vpop.xlane.xlu1 %1297  ;;  %v1301_v51 = vpop.xlane.xlu0 %1300 }
 0x2f4   : > { %v1308_v52 = vsub.f32 %v1292_v23, %v1298_v50  ;;  %v1309_v53 = vsub.f32 %v1293_v25, %v1301_v51 }
 0x2f6   : > { %v1312_v54 = vmul.f32 1.442695, %v1308_v52  ;;  %v1314_v55 = vmul.f32 1.442695, %v1309_v53 }
 0x2f8   : > { %3931 = vpow2.f32 %v1312_v54 }
 0x2f9   : > { %3933 = vpow2.f32 %v1314_v55 }
 0x2fb   : > { %v1304_v59 = vpop.xlane.xlu0 %1303  ;;  %v1307_v60 = vpop.xlane.xlu1 %1306 }
 0x2fc   : > { %v1310_v61 = vsub.f32 %v1294_v38, %v1304_v59  ;;  %v1311_v62 = vsub.f32 %v1295_v39, %v1307_v60 }
 0x2fe   : > { %v1316_v63 = vmul.f32 1.442695, %v1310_v61  ;;  %v1318_v1 = vmul.f32 1.442695, %v1311_v62 }
 0x2ff   : > { %v946_v12 = vpop.permute.xlu0 %945  ;;  %v948_v13 = vpop.permute.xlu1 %947 }
 0x300   : > { %3935 = vpow2.f32 %v1316_v63 }
 0x301   : > { %3937 = vpow2.f32 %v1318_v1 }
 0x305   : > { %v4473_v56 = vpop.eup %3931 }
 0x306   : > { %v4475_v57 = vpop.eup %3933  ;;  %v1320_v58 = vsel %vm1101_vm2, %v4473_v56, 0.0 }
 0x307   : > { %1321 = vadd.xlane.f32.xlu0 %v1320_v58  ;;  %v1323_v26 = vsel %vm1101_vm2, %v4475_v57, 0.0 }
 0x308   : > { %1324 = vadd.xlane.f32.xlu1 %v1323_v26 }
 0x30d   : > { %v4483_v2 = vpop.eup %3935 }
 0x30e   : > { %v4485_v3 = vpop.eup %3937  ;;  %v1326_v4 = vsel %vm1101_vm2, %v4483_v2, 0.0 }
 0x30f   : > { %v1329_v6 = vsel %vm1101_vm2, %v4485_v3, 0.0 }
 0x319   : > { %951 = vrot.lane.b32.xlu1 %v944_v49, %s4958_s19 }
 0x31d   : > { %949 = vrot.lane.b32.xlu0 %v942_v48, %s4958_s19 }
 0x33c   : > { %1327 = vadd.xlane.f32.xlu0 %v1326_v4 }
 0x33d   : > { %1330 = vadd.xlane.f32.xlu1 %v1329_v6 }
 0x390   : > { %v1322_v15 = vpop.xlane.xlu0 %1321 }
 0x391   : > { %v1325_v16 = vpop.xlane.xlu1 %1324  ;;  %3939 = vrcp.f32 %v1322_v15 }
 0x392   : > { %3941 = vrcp.f32 %v1325_v16 }
 0x394   : > { %v950_v17 = vpop.permute.xlu0 %949 }
 0x395   : > { %v957_v18 = vcombine.low %v946_v12, %v950_v17  ;;  %v958_v19 = vcombine.high %v946_v12, %v950_v17  ;;  %v952_v20 = vpop.permute.xlu1 %951 }
 0x396   : > { %v973_v21 = vcombine.low %v948_v13, %v952_v20  ;;  %v974_v22 = vcombine.high %v948_v13, %v952_v20 }
 0x397   : > { %v965_v23 = vrot.slane %v957_v18, %v4390_v34  ;;  %v972_v25 = vrot.slane %v958_v19, %v4390_v34 }
 0x398   : > { %v981_v27 = vrot.slane %v973_v21, %v4390_v34  ;;  %v988_v28 = vrot.slane %v974_v22, %v4390_v34 }
 0x39a   : > { %v989_v29 = vcombine.low %v965_v23, %v981_v27  ;;  %v990_v7 = vcombine.high %v965_v23, %v981_v27  ;;  %v1005_v30 = vcombine.low %v972_v25, %v988_v28  ;;  %v1006_v31 = vcombine.high %v972_v25, %v988_v28  ;;  %v641_v25 = vld [vmem:[%s4946_s4] sm:$0xf]  ;;  %v643_v28 = vld [vmem:[%s4946_s4 + $0x8] sm:$0xf] }
 0x39c   : > { %v997_v32 = vrot.slane %v989_v29, %v4393_v41  ;;  %v1004_v33 = vrot.slane %v990_v7, %v4393_v41  ;;  %v1013_v35 = vrot.slane %v1005_v30, %v4393_v41  ;;  %v1020_v36 = vrot.slane %v1006_v31, %v4393_v41  ;;  %v644_v29 = vld [vmem:[%s4946_s4 + $0xc] sm:$0xf] }
 0x39e   : > { %v1025_v14 = vcombine.low %v997_v32, %v1004_v33  ;;  %v3500_v37 = vcombine.high %v997_v32, %v1004_v33  ;;  %v1041_v38 = vcombine.low %v1013_v35, %v1020_v36  ;;  %v3501_v39 = vcombine.high %v1013_v35, %v1020_v36  ;;  %v3940_v49 = vpop.eup %3939 }
 0x39f   : > { %v3942_v54 = vpop.eup %3941  ;;  %v1336_v62 = vmul.f32 %v3940_v49, %v4473_v56  ;;  %v1633_v33 = vsel %vm1351_vm4, %v643_v28, 0  ;;  %v1679_v35 = vsel %vm1351_vm4, %v644_v29, 0  ;;  %v493_v28 = vld [vmem:[%s486_s16 + $0x8] sm:$0xf] }
 0x3a0   : > { %v1032_v40 = vrot.slane %v1025_v14, %v4390_v34  ;;  %v1040_v42 = vrot.slane %v3500_v37, %v4390_v34  ;;  %v1048_v43 = vrot.slane %v1041_v38, %v4390_v34  ;;  %v1056_v44 = vrot.slane %v3501_v39, %v4390_v34 }
 0x3a1   : > { %v1337_v63 = vmul.f32 %v3942_v54, %v4475_v57  ;;  %v1340_v13 = vpack.c.bf16 %v1336_v62, %v1336_v62 }
 0x3a2   : > { %v1057_v45 = vcombine.low %v1032_v40, %v1040_v42  ;;  %v1073_v46 = vcombine.low %v1048_v43, %v1056_v44  ;;  %v1058_v47 = vcombine.high %v1032_v40, %v1040_v42  ;;  %v1074_v48 = vcombine.high %v1048_v43, %v1056_v44 }
 0x3a3   : > { %v1341_v15 = vpack.c.bf16 %v1337_v63, %v1337_v63  ;;  %v1730_v63 = vsub.s32 3, %v4363_v8 }
 0x3a4   : > { %v1065_v50 = vrot.slane %v1057_v45, %v4393_v41  ;;  %v1081_v51 = vrot.slane %v1073_v46, %v4393_v41  ;;  %v1072_v52 = vrot.slane %v1058_v47, %v4393_v41  ;;  %v1088_v53 = vrot.slane %v1074_v48, %v4393_v41 }
 0x3a6   : > { %v1089_v55 = vcombine.low %v1065_v50, %v1081_v51  ;;  %v1090_v58 = vcombine.high %v1065_v50, %v1081_v51  ;;  %v1091_v26 = vcombine.low %v1072_v52, %v1088_v53  ;;  %v1092_v59 = vcombine.high %v1072_v52, %v1088_v53 }
 0x3a8   : > { %v1344_v60 = vpack.c.bf16 %v1089_v55, %v1089_v55  ;;  %v1345_v61 = vpack.c.bf16 %v1090_v58, %v1090_v58  ;;  %v1346_v6 = vpack.c.bf16 %v1091_v26, %v1091_v26  ;;  %v1347_v12 = vpack.c.bf16 %v1092_v59, %v1092_v59 }
 0x3aa   : > { %v1353_v1 = vsel %vm1351_vm4, %v1344_v60, 0  ;;  %v1399_v4 = vsel %vm1351_vm4, %v1345_v61, 0  ;;  %v1445_v56 = vsel %vm1351_vm4, %v1346_v6, 0  ;;  %v1491_v57 = vsel %vm1351_vm4, %v1347_v12, 0 }
 0x3ab   : > { %3663 = vmatpush3.bf16.msra.mxu0 %v1353_v1  ;;  %3669 = vmatpush3.bf16.msra.mxu1 %v1399_v4 }
 0x3ac   : > { %3674 = vmatprep.subr.bf16.mxu0 %v4140_v0  ;;  %3680 = vmatprep.subr.bf16.mxu1 %v4140_v0 }
 0x3ae   : > { %3665 = vmatmul.mubr.msk.bf16.vlgmr.msra.gmra.mxu0 %vm1101_vm2, %v1340_v13  ;;  %3671 = vmatmul.mubr.msk.bf16.vlgmr.msra.gmra.mxu1 %vm1101_vm2, %v1341_v15  ;;  %v1731_v15 = vrot.slane %v4366_v10, %v1730_v63 }
 0x3af   : > { %3675 = vmatpush3.bf16.msra.mxu0 %v1445_v56  ;;  %3681 = vmatpush3.bf16.msra.mxu1 %v1491_v57 }
 0x3b0   : > { %3676 = vmatprep.mubr.msk.bf16.mxu0 %vm4141_vm0, %v4140_v0  ;;  %3682 = vmatprep.mubr.msk.bf16.mxu1 %vm4141_vm0, %v4140_v0 }
 0x3b1   : > { %3686 = vmatprep.subr.bf16.mxu0 %v4140_v0  ;;  %3692 = vmatprep.subr.bf16.mxu1 %v4140_v0 }
 0x3c5   : > { %v1328_v16 = vpop.xlane.xlu0 %1327 }
 0x3c6   : > { %3943 = vrcp.f32 %v1328_v16  ;;  %v1331_v17 = vpop.xlane.xlu1 %1330 }
 0x3c7   : > { %3945 = vrcp.f32 %v1331_v17 }
 0x3d3   : > { %v3944_v18 = vpop.eup %3943 }
 0x3d4   : > { %v3946_v19 = vpop.eup %3945  ;;  %v1338_v20 = vmul.f32 %v3944_v18, %v4483_v2  ;;  %v642_v2 = vld [vmem:[%s4946_s4 + $0x4] sm:$0xf] }
 0x3d5   : > { %v1339_v21 = vmul.f32 %v3946_v19, %v4485_v3  ;;  %v1541_v3 = vsel %vm1351_vm4, %v641_v25, 0  ;;  %v1587_v27 = vsel %vm1351_vm4, %v642_v2, 0  ;;  %v3921_v2 = vld [vmem:[%s4948_s6 + $0x8] sm:$0xff]  }
 0x3d6   : > { %v1342_v22 = vpack.c.bf16 %v1338_v20, %v1338_v20 }
 0x3d7   : > { %v1343_v23 = vpack.c.bf16 %v1339_v21, %v1339_v21 }
 0x3d8   : > { %3677 = vmatmul.mubr.msk.bf16.vlgmr.msra.gmra.mxu0 %vm1101_vm2, %v1342_v22 }
 0x3d9   : > { %3683 = vmatmul.mubr.msk.bf16.vlgmr.msra.gmra.mxu1 %vm1101_vm2, %v1343_v23  ;;  %3688 = vmatprep.mubr.msk.bf16.mxu0 %vm4141_vm0, %v4140_v0 }
 0x3da   : > { %3694 = vmatprep.mubr.msk.bf16.mxu1 %vm4141_vm0, %v4140_v0  ;;  %3687 = vmatpush3.bf16.msra.mxu0 %v1541_v3  ;;  %v3922_v3 = vld [vmem:[%s4948_s6] sm:$0xff]  }
 0x3db   : > { %3693 = vmatpush3.bf16.msra.mxu1 %v1587_v27  ;;  %3698 = vmatprep.subr.bf16.mxu0 %v4140_v0  ;;  %v492_v27 = vld [vmem:[%s486_s16] sm:$0xff] }
 0x3dc   : > { %3704 = vmatprep.subr.bf16.mxu1 %v4140_v0 }
 0x46e   : > { %v1389_v7 = vpop.f32.mrf.mxu0  ;;  %v1435_v30 = vpop.f32.mrf.mxu1 }
 0x46f   : > { %v1533_v31 = vpack.c.bf16 %v1389_v7, %v1389_v7  ;;  %v1534_v32 = vpack.c.bf16 %v1435_v30, %v1435_v30 }
 0x470   : > { %v3666_v36 = vpop.f32.mrf.mxu0  ;;  %v3672_v14 = vpop.f32.mrf.mxu1 }
 0x471   : > { %3689 = vmatmul.mubr.msk.bf16.vlgmr.msra.gmra.mxu0 %vm1101_vm2, %v1533_v31  ;;  %3695 = vmatmul.mubr.msk.bf16.vlgmr.msra.gmra.mxu1 %vm1101_vm2, %v1534_v32  ;;  %v1885_v36 = vsub.s32 7, %v4363_v8 }
 0x472   : > { %v1392_v37 = vpop.f32.mrf.mxu0  ;;  %v1438_v38 = vpop.f32.mrf.mxu1  ;;  %3699 = vmatpush3.bf16.msra.mxu0 %v1633_v33  ;;  %3705 = vmatpush3.bf16.msra.mxu1 %v1679_v35  ;;  %v3923_v33 = vld [vmem:[%s4947_s5 + $0x8] sm:$0xff]   ;;  %v3924_v35 = vld [vmem:[%s4947_s5] sm:$0xff]  }
 0x473   : > { %3700 = vmatprep.mubr.msk.bf16.mxu0 %vm4141_vm0, %v4140_v0  ;;  %3706 = vmatprep.mubr.msk.bf16.mxu1 %vm4141_vm0, %v4140_v0  ;;  %v1886_v14 = vrot.slane %v4366_v10, %v1885_v36 }
 0x474   : > { %v3667_v39 = vpop.f32.mrf.mxu0  ;;  %v3673_v40 = vpop.f32.mrf.mxu1  ;;  %3718 = vmatprep.subr.bf16.mxu1 %v4140_v0  ;;  %3710 = vmatprep.subr.bf16.mxu0 %v4140_v0 }
 0x498   : > { %v1481_v42 = vpop.f32.mrf.mxu0 }
 0x499   : > { %v1535_v43 = vpack.c.bf16 %v1481_v42, %v1481_v42  ;;  %v1527_v44 = vpop.f32.mrf.mxu1 }
 0x49a   : > { %v1536_v45 = vpack.c.bf16 %v1527_v44, %v1527_v44  ;;  %v3678_v46 = vpop.f32.mrf.mxu0 }
 0x49b   : > { %v3684_v47 = vpop.f32.mrf.mxu1  ;;  %3701 = vmatmul.mubr.msk.bf16.vlgmr.msra.gmra.mxu0 %vm1101_vm2, %v1535_v43 }
 0x49c   : > { %3707 = vmatmul.mubr.msk.bf16.vlgmr.msra.gmra.mxu1 %vm1101_vm2, %v1536_v45  ;;  %v1484_v48 = vpop.f32.mrf.mxu0  ;;  %3714 = vmatprep.mubr.msk.bf16.mxu0 %vm4141_vm0, %v4140_v0  ;;  %v1750_v47 = vsub.s32 4, %v4363_v8 }
 0x49d   : > { %v1530_v49 = vpop.f32.mrf.mxu1  ;;  %3722 = vmatprep.mubr.msk.bf16.mxu1 %vm4141_vm0, %v4140_v0  ;;  %3719 = vmatpush3.bf16.msra.mxu1 %v3921_v2  ;;  %v1755_v48 = vsub.s32 5, %v4363_v8 }
 0x49e   : > { %v3679_v50 = vpop.f32.mrf.mxu0  ;;  %3720 = vmatprep.subr.bf16.mxu1 %v4140_v0  ;;  %3711 = vmatpush3.bf16.msra.mxu0 %v3923_v33  ;;  %v1751_v49 = vrot.slane %v4366_v10, %v1750_v47 }
 0x49f   : > { %v3685_v51 = vpop.f32.mrf.mxu1  ;;  %3712 = vmatprep.subr.bf16.mxu0 %v4140_v0 }
 0x4a1   : > { %3721 = vmatpush3.bf16.msra.mxu1 %v3922_v3 }
 0x4a2   : > { %3732 = vmatprep.subr.bf16.mxu1 %v4140_v0  ;;  %3713 = vmatpush3.bf16.msra.mxu0 %v3924_v35 }
 0x4a3   : > { %3726 = vmatprep.subr.bf16.mxu0 %v4140_v0 }
 0x531   : > { %v1577_v52 = vpop.f32.mrf.mxu0  ;;  %v1623_v53 = vpop.f32.mrf.mxu1 }
 0x532   : > { %v1721_v61 = vsel %vm517_vm1, %v1577_v52, 0.0  ;;  %v1722_v62 = vsel %vm517_vm1, %v1623_v53, 0.0  ;;  %v1756_v52 = vrot.slane %v4366_v10, %v1755_v48 }
 0x533   : > { %v3690_v54 = vpop.f32.mrf.mxu0  ;;  %v3696_v55 = vpop.f32.mrf.mxu1  ;;  %v1723_v1 = vadd.f32 %v1722_v62, %v1721_v61 }
 0x535   : > { %v1580_v58 = vpop.f32.mrf.mxu0  ;;  %v1626_v26 = vpop.f32.mrf.mxu1 }
 0x537   : > { %v3691_v59 = vpop.f32.mrf.mxu0  ;;  %v3697_v60 = vpop.f32.mrf.mxu1 }
 0x55b   : > { %v1669_v4 = vpop.f32.mrf.mxu0 }
 0x55c   : > { %v1724_v6 = vsel %vm517_vm1, %v1669_v4, 0.0  ;;  %v1715_v12 = vpop.f32.mrf.mxu1 }
 0x55d   : > { %v1725_v13 = vadd.f32 %v1724_v6, %v1723_v1  ;;  %v3702_v56 = vpop.f32.mrf.mxu0  ;;  %v1726_v57 = vsel %vm517_vm1, %v1715_v12, 0.0 }
 0x55e   : > { %v3708_v16 = vpop.f32.mrf.mxu1 }
 0x55f   : > { %v1727_v17 = vadd.f32 %v1726_v57, %v1725_v13  ;;  %v1672_v18 = vpop.f32.mrf.mxu0 }
 0x560   : > { %v1718_v19 = vpop.f32.mrf.mxu1 }
 0x561   : > { %v1732_v20 = vadd.f32 %v1731_v15, %v1727_v17  ;;  %v3703_v21 = vpop.f32.mrf.mxu0 }
 0x562   : > { %v3709_v22 = vpop.f32.mrf.mxu1 }
 0x563   : > { %v1733_v23 = vadd.f32 %v1732_v20, %v4350_v5  ;;  %v1822_v5 = vpack.c.bf16 %v493_v28, %v492_v27 }
 0x565   : > { %v1734_v25 = vsel %vm517_vm1, %v1733_v23, 0.0  ;;  %3723 = vmatmul.mubr.msk.bf16.vlgmr.msra.gmra.mxu1 %vm517_vm1, %v1822_v5 }
 0x566   : > { %1735 = vadd.xlane.f32.xlu0 %v1734_v25  ;;  %3734 = vmatprep.mubr.msk.bf16.mxu1 %vm4141_vm0, %v4140_v0 }
 0x5ef   : > { %v1736_v29 = vpop.xlane.xlu0 %1735 }
 0x5f0   : > { %v1738_v7 = vmul.f32 0.03125, %v1736_v29 }
 0x5f2   : > { %v1739_v30 = vsub.f32 %v1733_v23, %v1738_v7 }
 0x5f4   : > { %v1740_v31 = vmul.f32 %v1739_v30, %v1739_v30 }
 0x5f6   : > { %v1741_v32 = vsel %vm517_vm1, %v1740_v31, 0.0 }
 0x5f7   : > { %1742 = vadd.xlane.f32.xlu0 %v1741_v32 }
 0x625   : > { %v4599_v37 = vpop.f32.mrf.mxu1 }
 0x626   : > { %v1887_v38 = vadd.f32 %v1886_v14, %v4599_v37 }
 0x627   : > { %v3724_v39 = vpop.f32.mrf.mxu1 }
 0x628   : > { %2051 = vrot.lane.b32.xlu1 %v1887_v38, %s4143_s18  ;;  %2057 = vrot.lane.b32.xlu0 %v1887_v38, %s4144_s28 }
 0x629   : > { %v4604_v40 = vpop.f32.mrf.mxu1 }
 0x62a   : > { %v1888_v42 = vadd.f32 %v1886_v14, %v4604_v40 }
 0x62b   : > { %v3725_v43 = vpop.f32.mrf.mxu1 }
 0x62c   : > { %2063 = vrot.lane.b32.xlu1 %v1887_v38, %s4142_s17  ;;  %2059 = vrot.lane.b32.xlu0 %v1888_v42, %s4144_s28 }
 0x630   : > { %2053 = vrot.lane.b32.xlu1 %v1888_v42, %s4143_s18 }
 0x634   : > { %2065 = vrot.lane.b32.xlu1 %v1888_v42, %s4142_s17 }
 0x680   : > { %v1743_v44 = vpop.xlane.xlu0 %1742 }
 0x681   : > { %v1744_v45 = vmul.f32 0.03125, %v1743_v44 }
 0x683   : > { %v1745_v46 = vadd.f32 1e-05, %v1744_v45 }
 0x685   : > { %3947 = vrsqrt.f32 %v1745_v46 }
 0x692   : > { %v3948_v50 = vpop.eup %3947 }
 0x693   : > { %v1747_v51 = vmul.f32 %v3948_v50, %v1739_v30 }
 0x695   : > { %v1752_v53 = vmul.f32 %v1751_v49, %v1747_v51 }
 0x697   : > { %v4619_v54 = vadd.f32 %v1756_v52, %v1752_v53 }
 0x699   : > { %v1758_v55 = vpack.c.bf16 %v4619_v54, %v4619_v54 }
 0x69a   : > { %v2052_v58 = vpop.permute.xlu1 %2051  ;;  %v2058_v59 = vpop.permute.xlu0 %2057 }
 0x69b   : > { %3715 = vmatmul.mubr.msk.bf16.vlgmr.msra.gmra.mxu0 %vm517_vm1, %v1758_v55  ;;  %v2069_v6 = vcombine.low %v1887_v38, %v2058_v59  ;;  %v2070_v12 = vcombine.high %v1887_v38, %v2058_v59 }
 0x69c   : > { %3728 = vmatprep.mubr.msk.bf16.mxu0 %vm4141_vm0, %v4140_v0 }
 0x69d   : > { %v2077_v16 = vrot.slane %v2069_v6, %v4390_v34  ;;  %v2084_v17 = vrot.slane %v2070_v12, %v4390_v34 }
 0x69e   : > { %v2064_v26 = vpop.permute.xlu1 %2063  ;;  %v2060_v61 = vpop.permute.xlu0 %2059 }
 0x69f   : > { %v2085_v1 = vcombine.low %v2052_v58, %v2064_v26  ;;  %v2086_v4 = vcombine.high %v2052_v58, %v2064_v26  ;;  %v2137_v13 = vcombine.low %v1888_v42, %v2060_v61 }
 0x6a1   : > { %v2093_v56 = vrot.slane %v2085_v1, %v4390_v34  ;;  %v2100_v57 = vrot.slane %v2086_v4, %v4390_v34  ;;  %v2144_v18 = vrot.slane %v2137_v13, %v4390_v34 }
 0x6a2   : > { %v2054_v60 = vpop.permute.xlu1 %2053 }
 0x6a3   : > { %v2101_v20 = vcombine.low %v2077_v16, %v2093_v56  ;;  %v2102_v21 = vcombine.high %v2077_v16, %v2093_v56  ;;  %v2117_v22 = vcombine.low %v2084_v17, %v2100_v57  ;;  %v2118_v23 = vcombine.high %v2084_v17, %v2100_v57 }
 0x6a5   : > { %v2109_v3 = vrot.slane %v2101_v20, %v4393_v41  ;;  %v2116_v27 = vrot.slane %v2102_v21, %v4393_v41  ;;  %v2125_v28 = vrot.slane %v2117_v22, %v4393_v41  ;;  %v2132_v5 = vrot.slane %v2118_v23, %v4393_v41  ;;  %v4664_v20 = vld [vmem:[#allocation7 + $0x8] sm:$0xff] }
 0x6a6   : > { %v2066_v62 = vpop.permute.xlu1 %2065 }
 0x6a7   : > { %v2145_v15 = vcombine.low %v2054_v60, %v2066_v62  ;;  %v2171_v30 = vcombine.low %v2109_v3, %v2116_v27  ;;  %v3522_v31 = vcombine.high %v2109_v3, %v2116_v27  ;;  %v2187_v32 = vcombine.low %v2125_v28, %v2132_v5 }
 0x6a8   : > { %v3523_v33 = vcombine.high %v2125_v28, %v2132_v5 }
 0x6a9   : > { %v2152_v19 = vrot.slane %v2145_v15, %v4390_v34  ;;  %v2178_v14 = vrot.slane %v2171_v30, %v4390_v34  ;;  %v2186_v38 = vrot.slane %v3522_v31, %v4390_v34  ;;  %v2194_v39 = vrot.slane %v2187_v32, %v4390_v34 }
 0x6aa   : > { %v2202_v42 = vrot.slane %v3523_v33, %v4390_v34 }
 0x6ab   : > { %v2153_v25 = vcombine.low %v2144_v18, %v2152_v19  ;;  %v2154_v2 = vcombine.high %v2144_v18, %v2152_v19  ;;  %v2203_v45 = vcombine.low %v2178_v14, %v2186_v38  ;;  %v2204_v49 = vcombine.high %v2178_v14, %v2186_v38 }
 0x6ac   : > { %v2219_v46 = vcombine.low %v2194_v39, %v2202_v42  ;;  %v2220_v50 = vcombine.high %v2194_v39, %v2202_v42  ;;  %v1765_v18 = vsub.s32 6, %v4363_v8 }
 0x6ad   : > { %v2161_v29 = vrot.slane %v2153_v25, %v4393_v41  ;;  %v2168_v7 = vrot.slane %v2154_v2, %v4393_v41  ;;  %v2211_v51 = vrot.slane %v2203_v45, %v4393_v41  ;;  %v2218_v55 = vrot.slane %v2204_v49, %v4393_v41 }
 0x6ae   : > { %v2227_v52 = vrot.slane %v2219_v46, %v4393_v41  ;;  %v2234_v58 = vrot.slane %v2220_v50, %v4393_v41  ;;  %v1766_v19 = vrot.slane %v4366_v10, %v1765_v18  ;;  %v1892_v25 = vrot.slane %v4664_v20, %v503_v11 }
 0x6af   : > { %v2239_v35 = vcombine.low %v2161_v29, %v2168_v7  ;;  %v3524_v36 = vcombine.high %v2161_v29, %v2168_v7 }
 0x6b0   : > { %v2235_v59 = vcombine.low %v2211_v51, %v2227_v52  ;;  %v2236_v61 = vcombine.high %v2211_v51, %v2227_v52  ;;  %v2237_v62 = vcombine.low %v2218_v55, %v2234_v58  ;;  %v2238_v12 = vcombine.high %v2218_v55, %v2234_v58 }
 0x6b1   : > { %v2246_v43 = vrot.slane %v2239_v35, %v4390_v34  ;;  %v2254_v44 = vrot.slane %v3524_v36, %v4390_v34 }
 0x6b3   : > { %v2255_v53 = vcombine.low %v2246_v43, %v2254_v44  ;;  %v2256_v26 = vcombine.high %v2246_v43, %v2254_v44 }
 0x6b5   : > { %v2263_v60 = vrot.slane %v2255_v53, %v4393_v41  ;;  %v2270_v1 = vrot.slane %v2256_v26, %v4393_v41 }
 0x6b7   : > { %v2519_v4 = vpack.c.bf16 %v2263_v60, %v2235_v59  ;;  %v2271_v6 = vcombine.high %v2263_v60, %v4140_v0  ;;  %v4651_v13 = vpack.c.bf16 %v2270_v1, %v2237_v62  ;;  %v2272_v15 = vcombine.high %v2270_v1, %v4140_v0 }
 0x6b9   : > { %v2527_v56 = vsel %vm1101_vm2, %v2519_v4, 0  ;;  %v2520_v57 = vpack.c.bf16 %v2271_v6, %v2236_v61  ;;  %v4655_v16 = vpack.c.bf16 %v2272_v15, %v2238_v12 }
 0x6ba   : > { %3727 = vmatpush3.bf16.xpose.msra.mxu0 %v2527_v56 }
 0x6bb   : > { %v2573_v17 = vsel %vm1101_vm2, %v2520_v57, 0  ;;  %3738 = vmatprep.subr.bf16.mxu0 %v4140_v0 }
 0x6bc   : > { %3733 = vmatpush3.bf16.xpose.msra.mxu1 %v2573_v17  ;;  %v2619_v17 = vsel %vm1101_vm2, %v4651_v13, 0 }
 0x6bd   : > { %3744 = vmatprep.subr.bf16.mxu1 %v4140_v0 }
 0x75b   : > { %v1816_v21 = vpop.f32.mrf.mxu0 }
 0x75c   : > { %v1817_v22 = vadd.f32 %v1816_v21, %v1766_v19  ;;  %v2665_v19 = vsel %vm1101_vm2, %v4655_v16, 0 }
 0x75d   : > { %v3716_v23 = vpop.f32.mrf.mxu0 }
 0x75e   : > { %1904 = vrot.lane.b32.xlu0 %v1817_v22, %s4143_s18  ;;  %1907 = vrot.lane.b32.xlu1 %v1817_v22, %s4144_s28 }
 0x75f   : > { %v1819_v2 = vpop.f32.mrf.mxu0 }
 0x761   : > { %v3717_v3 = vpop.f32.mrf.mxu0 }
 0x762   : > { %1910 = vrot.lane.b32.xlu0 %v1817_v22, %s4142_s17  ;;  %1894 = vrot.lane.b32.xlu1 %v1892_v25, %s4145_s14  ;;  %s4971_s14 = smov 96  }
 0x7d0   : > { %v1905_v10 = vpop.permute.xlu0 %1904  ;;  %v1908_v27 = vpop.permute.xlu1 %1907 }
 0x7d1   : > { %v1913_v28 = vcombine.low %v1817_v22, %v1908_v27  ;;  %v1914_v5 = vcombine.high %v1817_v22, %v1908_v27 }
 0x7d3   : > { %v1921_v33 = vrot.slane %v1913_v28, %v4390_v34  ;;  %v1928_v11 = vrot.slane %v1914_v5, %v4390_v34 }
 0x7d4   : > { %v1911_v29 = vpop.permute.xlu0 %1910  ;;  %v1895_v7 = vpop.permute.xlu1 %1894 }
 0x7d5   : > { %v1929_v30 = vcombine.low %v1905_v10, %v1911_v29  ;;  %v1930_v31 = vcombine.high %v1905_v10, %v1911_v29  ;;  %v1897_v32 = vadd.f32 %v1895_v7, %v4599_v37  ;;  %v4681_v14 = vadd.f32 %v1895_v7, %v4604_v40 }
 0x7d7   : > { %v1937_v35 = vrot.slane %v1929_v30, %v4390_v34  ;;  %v1944_v36 = vrot.slane %v1930_v31, %v4390_v34  ;;  %2279 = vrot.lane.b32.xlu0 %v1897_v32, %s4144_s28  ;;  %2275 = vrot.lane.b32.xlu1 %v1897_v32, %s4143_s18 }
 0x7d9   : > { %v1945_v38 = vcombine.low %v1921_v33, %v1937_v35  ;;  %v1946_v39 = vcombine.high %v1921_v33, %v1937_v35  ;;  %v1961_v42 = vcombine.low %v1928_v11, %v1944_v36  ;;  %v1962_v43 = vcombine.high %v1928_v11, %v1944_v36 }
 0x7db   : > { %v1953_v37 = vrot.slane %v1945_v38, %v4393_v41  ;;  %v1960_v44 = vrot.slane %v1946_v39, %v4393_v41  ;;  %v1969_v45 = vrot.slane %v1961_v42, %v4393_v41  ;;  %v1976_v46 = vrot.slane %v1962_v43, %v4393_v41  ;;  %2281 = vrot.lane.b32.xlu0 %v4681_v14, %s4144_s28 }
 0x7dc   : > { %2283 = vrot.lane.b32.xlu1 %v1897_v32, %s4142_s17 }
 0x7dd   : > { %v1981_v49 = vcombine.low %v1953_v37, %v1960_v44  ;;  %v3520_v40 = vcombine.high %v1953_v37, %v1960_v44  ;;  %v1997_v50 = vcombine.low %v1969_v45, %v1976_v46  ;;  %v3521_v51 = vcombine.high %v1969_v45, %v1976_v46 }
 0x7df   : > { %v1988_v52 = vrot.slane %v1981_v49, %v4390_v34  ;;  %v1996_v53 = vrot.slane %v3520_v40, %v4390_v34  ;;  %v2004_v55 = vrot.slane %v1997_v50, %v4390_v34  ;;  %v2012_v58 = vrot.slane %v3521_v51, %v4390_v34  ;;  %2287 = vrot.lane.b32.xlu0 %v1897_v32, %s4971_s14 }
 0x7e0   : > { %2277 = vrot.lane.b32.xlu1 %v4681_v14, %s4143_s18 }
 0x7e1   : > { %v2013_v26 = vcombine.low %v1988_v52, %v1996_v53  ;;  %v2029_v59 = vcombine.low %v2004_v55, %v2012_v58  ;;  %v2014_v60 = vcombine.high %v1988_v52, %v1996_v53  ;;  %v2030_v61 = vcombine.high %v2004_v55, %v2012_v58 }
 0x7e3   : > { %v2021_v62 = vrot.slane %v2013_v26, %v4393_v41  ;;  %v2037_v1 = vrot.slane %v2029_v59, %v4393_v41  ;;  %v2028_v56 = vrot.slane %v2014_v60, %v4393_v41  ;;  %v2044_v57 = vrot.slane %v2030_v61, %v4393_v41 }
 0x7e4   : > { %2285 = vrot.lane.b32.xlu1 %v4681_v14, %s4142_s17  ;;  %s477_s17 = scalar_lea.vmem [#allocation8], %s3486_s20 }
 0x7e5   : > { %v2045_v4 = vcombine.low %v2021_v62, %v2037_v1  ;;  %v2046_v6 = vcombine.high %v2021_v62, %v2037_v1  ;;  %v2047_v21 = vcombine.low %v2028_v56, %v2044_v57  ;;  %v2048_v22 = vcombine.high %v2028_v56, %v2044_v57  ;;  %s3362_s18 = sshll.u32 %s477_s17, 4  ;;  %s3363_s18 = int_to_ptr.vmem [resolvable:$true] %s3362_s18 }
 0x7e6   : > { %s4047_s29 = scalar_lea.vmem %s3363_s18, 128  ;;  %p4054_p3 = scmp.lt.s32.totalorder %s3363_s18, %s4052_s8 }
 0x7e7   : > { %v2515_v12 = vpack.c.bf16 %v2045_v4, %v2045_v4  ;;  %v2516_v15 = vpack.c.bf16 %v2046_v6, %v2046_v6  ;;  %v2517_v23 = vpack.c.bf16 %v2047_v21, %v2047_v21  ;;  %v2518_v25 = vpack.c.bf16 %v2048_v22, %v2048_v22  ;;  %p4048_p10 = scmp.ne.s32.totalorder %s3363_s18, %s4047_s29 }
 0x7e9   : > { %3729 = vmatmul.mubr.msk.bf16.vlgmr.msra.gmra.mxu0 %vm1101_vm2, %v2515_v12  ;;  %3735 = vmatmul.mubr.msk.bf16.vlgmr.msra.gmra.mxu1 %vm1101_vm2, %v2516_v15  ;;  %p4049_p11 = pnand %p4048_p10, %p4255_p4 }
 0x7ea   : > { %3739 = vmatpush3.bf16.xpose.msra.mxu0 %v2619_v17  ;;  %3745 = vmatpush3.bf16.xpose.msra.mxu1 %v2665_v19 }
 0x7eb   : > { %3740 = vmatprep.mubr.msk.bf16.mxu0 %vm4141_vm0, %v4140_v0  ;;  %3746 = vmatprep.mubr.msk.bf16.mxu1 %vm4141_vm0, %v4140_v0  ;;  %p4050_p13 = pneg %p4049_p11 }
 0x7ec   : > { %3750 = vmatprep.subr.bf16.mxu0 %v4140_v0  ;;  %3756 = vmatprep.subr.bf16.mxu1 %v4140_v0 }
 0x7f1   : > { %3741 = vmatmul.mubr.msk.bf16.vlgmr.msra.gmra.mxu0 %vm1101_vm2, %v2517_v23  ;;  %3747 = vmatmul.mubr.msk.bf16.vlgmr.msra.gmra.mxu1 %vm1101_vm2, %v2518_v25 }
 0x7f2   : > { %3752 = vmatprep.mubr.msk.bf16.mxu0 %vm4141_vm0, %v4140_v0  ;;  %3758 = vmatprep.mubr.msk.bf16.mxu1 %vm4141_vm0, %v4140_v0 }
 0x849   : > { %v2280_v13 = vpop.permute.xlu0 %2279  ;;  %v2276_v16 = vpop.permute.xlu1 %2275 }
 0x84a   : > { %2295 = vrot.lane.b32.xlu0 %v2280_v13, %s4971_s14  ;;  %2291 = vrot.lane.b32.xlu1 %v2276_v16, %s4971_s14 }
 0x84d   : > { %v4732_v38 = vpop.permute.xlu0 %2281 }
 0x84e   : > { %v2284_v2 = vpop.permute.xlu1 %2283 }
 0x84f   : > { %2299 = vrot.lane.b32.xlu1 %v2284_v2, %s4971_s14 }
 0x851   : > { %v2288_v53 = vpop.permute.xlu0 %2287 }
 0x852   : > { %v2278_v39 = vpop.permute.xlu1 %2277 }
 0x856   : > { %v2286_v51 = vpop.permute.xlu1 %2285 }
 0x8a9   : > { %v2563_v3 = vpop.f32.mrf.mxu0  ;;  %v2609_v10 = vpop.f32.mrf.mxu1 }
 0x8aa   : > { %v4724_v27 = vmul.f32 0.35355338, %v2563_v3  ;;  %v4726_v28 = vmul.f32 0.35355338, %v2609_v10 }
 0x8ab   : > { %v3730_v5 = vpop.f32.mrf.mxu0  ;;  %v3736_v29 = vpop.f32.mrf.mxu1 }
 0x8ac   : > { %v2712_v7 = vsel %vm2711_vm5, %v4724_v27, -inf  ;;  %v2715_v30 = vsel %vm2711_vm5, %v4726_v28, -inf }
 0x8ad   : > { %v2566_v31 = vpop.f32.mrf.mxu0  ;;  %2713 = vmax.xlane.f32.xlu0 %v2712_v7  ;;  %2716 = vmax.xlane.f32.xlu1 %v2715_v30  ;;  %v2612_v32 = vpop.f32.mrf.mxu1 }
 0x8af   : > { %v3731_v33 = vpop.f32.mrf.mxu0  ;;  %v3737_v11 = vpop.f32.mrf.mxu1 }
 0x8b1   : > { %v2655_v35 = vpop.f32.mrf.mxu0  ;;  %v2701_v36 = vpop.f32.mrf.mxu1 }
 0x8b2   : > { %v4734_v42 = vmul.f32 0.35355338, %v2655_v35  ;;  %v4736_v44 = vmul.f32 0.35355338, %v2701_v36 }
 0x8b3   : > { %v3742_v43 = vpop.f32.mrf.mxu0  ;;  %v3748_v37 = vpop.f32.mrf.mxu1 }
 0x8b4   : > { %v2718_v45 = vsel %vm2711_vm5, %v4734_v42, -inf  ;;  %v2721_v52 = vsel %vm2711_vm5, %v4736_v44, -inf }
 0x8b5   : > { %v2658_v46 = vpop.f32.mrf.mxu0  ;;  %2719 = vmax.xlane.f32.xlu0 %v2718_v45  ;;  %v2704_v49 = vpop.f32.mrf.mxu1 }
 0x8b7   : > { %v3743_v40 = vpop.f32.mrf.mxu0  ;;  %v3749_v50 = vpop.f32.mrf.mxu1 }
 0x8b9   : > { %2722 = vmax.xlane.f32.xlu0 %v2721_v52 }
 0x8bc   : > { %v2292_v55 = vpop.permute.xlu1 %2291  ;;  %v2296_v58 = vpop.permute.xlu0 %2295 }
 0x8bd   : > { %v2311_v26 = vcombine.low %v2288_v53, %v2296_v58  ;;  %v2312_v59 = vcombine.high %v2288_v53, %v2296_v58 }
 0x8be   : > { %2293 = vrot.lane.b32.xlu1 %v2278_v39, %s4971_s14 }
 0x8bf   : > { %v2319_v1 = vrot.slane %v2311_v26, %v4390_v34  ;;  %v2326_v4 = vrot.slane %v2312_v59, %v4390_v34 }
 0x8c1   : > { %v2300_v60 = vpop.permute.xlu1 %2299 }
 0x8c2   : > { %v2327_v61 = vcombine.low %v2292_v55, %v2300_v60  ;;  %v2328_v62 = vcombine.high %v2292_v55, %v2300_v60 }
 0x8c4   : > { %v2335_v6 = vrot.slane %v2327_v61, %v4390_v34  ;;  %v2342_v12 = vrot.slane %v2328_v62, %v4390_v34 }
 0x8c6   : > { %v2343_v15 = vcombine.low %v2319_v1, %v2335_v6  ;;  %v2344_v56 = vcombine.high %v2319_v1, %v2335_v6  ;;  %v2359_v57 = vcombine.low %v2326_v4, %v2342_v12  ;;  %v2360_v17 = vcombine.high %v2326_v4, %v2342_v12 }
 0x8c8   : > { %v2351_v19 = vrot.slane %v2343_v15, %v4393_v41  ;;  %v2358_v21 = vrot.slane %v2344_v56, %v4393_v41  ;;  %v2367_v22 = vrot.slane %v2359_v57, %v4393_v41  ;;  %v2374_v23 = vrot.slane %v2360_v17, %v4393_v41 }
 0x8ca   : > { %v2413_v25 = vcombine.low %v2351_v19, %v2358_v21  ;;  %v3525_v13 = vcombine.high %v2351_v19, %v2358_v21  ;;  %v2429_v16 = vcombine.low %v2367_v22, %v2374_v23  ;;  %v3526_v2 = vcombine.high %v2367_v22, %v2374_v23 }
 0x8cc   : > { %v2420_v3 = vrot.slane %v2413_v25, %v4390_v34  ;;  %v2428_v10 = vrot.slane %v3525_v13, %v4390_v34  ;;  %v2436_v5 = vrot.slane %v2429_v16, %v4390_v34  ;;  %v2444_v29 = vrot.slane %v3526_v2, %v4390_v34 }
 0x8ce   : > { %v2445_v7 = vcombine.low %v2420_v3, %v2428_v10  ;;  %v2461_v30 = vcombine.low %v2436_v5, %v2444_v29  ;;  %v2446_v31 = vcombine.high %v2420_v3, %v2428_v10  ;;  %v2462_v32 = vcombine.high %v2436_v5, %v2444_v29 }
 0x8cf   : > { %2289 = vrot.lane.b32.xlu0 %v4681_v14, %s4971_s14 }
 0x8d0   : > { %v4758_v33 = vrot.slane %v2445_v7, %v4393_v41  ;;  %v4761_v11 = vrot.slane %v2461_v30, %v4393_v41  ;;  %v4764_v35 = vrot.slane %v2446_v31, %v4393_v41  ;;  %v4767_v36 = vrot.slane %v2462_v32, %v4393_v41 }
 0x8d2   : > { %v2477_v39 = vcombine.low %v4758_v33, %v4761_v11  ;;  %v2478_v43 = vcombine.high %v4758_v33, %v4761_v11  ;;  %v2479_v14 = vcombine.low %v4764_v35, %v4767_v36  ;;  %v2480_v37 = vcombine.high %v4764_v35, %v4767_v36 }
 0x936   : > { %v2714_v45 = vpop.xlane.xlu0 %2713  ;;  %v2717_v46 = vpop.xlane.xlu1 %2716 }
 0x937   : > { %v2724_v49 = vsub.f32 %v4724_v27, %v2714_v45  ;;  %v2725_v40 = vsub.f32 %v4726_v28, %v2717_v46 }
 0x939   : > { %v2728_v50 = vmul.f32 1.442695, %v2724_v49  ;;  %v2730_v52 = vmul.f32 1.442695, %v2725_v40 }
 0x93b   : > { %3949 = vpow2.f32 %v2728_v50 }
 0x93c   : > { %3951 = vpow2.f32 %v2730_v52 }
 0x93e   : > { %v2720_v59 = vpop.xlane.xlu0 %2719 }
 0x93f   : > { %v2726_v28 = vsub.f32 %v4734_v42, %v2720_v59  ;;  %v2294_v42 = vpop.permute.xlu1 %2293 }
 0x941   : > { %v2732_v61 = vmul.f32 1.442695, %v2726_v28  ;;  %v1899_v28 = vld [vmem:[#allocation2] sm:$0xf] }
 0x942   : > { %v2723_v27 = vpop.xlane.xlu0 %2722 }
 0x943   : > { %v2727_v60 = vsub.f32 %v4736_v44, %v2723_v27  ;;  %3953 = vpow2.f32 %v2732_v61  ;;  %v1900_v61 = vld [vmem:[#allocation2 + $0x4] sm:$0xf] }
 0x945   : > { %v2734_v62 = vmul.f32 1.442695, %v2727_v60  ;;  %v2957_v60 = vsel %vm1351_vm4, %v1899_v28, 0 }
 0x946   : > { %v2290_v6 = vpop.permute.xlu0 %2289 }
 0x947   : > { %3955 = vpow2.f32 %v2734_v62  ;;  %v3003_v62 = vsel %vm1351_vm4, %v1900_v61, 0 }
 0x948   : > { %v3950_v53 = vpop.eup %3949 }
 0x949   : > { %v3952_v55 = vpop.eup %3951  ;;  %v2736_v58 = vsel %vm2711_vm5, %v3950_v53, 0.0 }
 0x94a   : > { %v2739_v26 = vsel %vm2711_vm5, %v3952_v55, 0.0  ;;  %2737 = vadd.xlane.f32.xlu0 %v2736_v58 }
 0x94b   : > { %2740 = vadd.xlane.f32.xlu1 %v2739_v26 }
 0x950   : > { %v4786_v1 = vpop.eup %3953 }
 0x954   : > { %v4788_v4 = vpop.eup %3955 }
 0x95c   : > { %2301 = vrot.lane.b32.xlu1 %v2286_v51, %s4971_s14  ;;  %v2742_v51 = vsel %vm2711_vm5, %v4786_v1, 0.0 }
 0x960   : > { %2297 = vrot.lane.b32.xlu0 %v4732_v38, %s4971_s14  ;;  %v2745_v38 = vsel %vm2711_vm5, %v4788_v4, 0.0  ;;  %s3550_s14 = sshll.u32 %s4123_s24, 7  ;;  %s4053_s24 = scalar_lea.vmem %s4052_s8, 256 }
 0x961   : > { %s3360_s16 = scalar_lea.hbm %s4954_s12, %s3550_s14  ;;  %p4055_p6 = scmp.lt.s32.totalorder %s4053_s24, %s4047_s29 }
 0x963   : > { %p4056_p7 = por %p4055_p6, %p4054_p3 }
 0x965   : > { %p4057_p9 = pnand %p4056_p7, %p4050_p13 }
 0x97f   : > { %2743 = vadd.xlane.f32.xlu0 %v2742_v51  ;;  %v1902_v51 = vld [vmem:[#allocation2 + $0xc] sm:$0xf] }
 0x980   : > { %2746 = vadd.xlane.f32.xlu1 %v2745_v38 }
 0x9d3   : > { %v2738_v12 = vpop.xlane.xlu0 %2737 }
 0x9d4   : > { %v2741_v44 = vpop.xlane.xlu1 %2740  ;;  %3957 = vrcp.f32 %v2738_v12 }
 0x9d5   : > { %3959 = vrcp.f32 %v2741_v44 }
 0x9d7   : > { %v2298_v15 = vpop.permute.xlu0 %2297 }
 0x9d8   : > { %v2302_v56 = vpop.permute.xlu1 %2301  ;;  %v2379_v57 = vcombine.low %v2290_v6, %v2298_v15  ;;  %v3095_v15 = vsel %vm1351_vm4, %v1902_v51, 0  ;;  %v3926_v51 = vld [vmem:[#allocation5] sm:$0xff]  }
 0x9d9   : > { %v2387_v17 = vcombine.low %v2294_v42, %v2302_v56 }
 0x9da   : > { %v2386_v19 = vrot.slane %v2379_v57, %v4390_v34 }
 0x9db   : > { %v2394_v21 = vrot.slane %v2387_v17, %v4390_v34 }
 0x9dd   : > { %v2395_v22 = vcombine.low %v2386_v19, %v2394_v21  ;;  %v2396_v23 = vcombine.high %v2386_v19, %v2394_v21 }
 0x9df   : > { %v2403_v25 = vrot.slane %v2395_v22, %v4393_v41  ;;  %v2410_v13 = vrot.slane %v2396_v23, %v4393_v41 }
 0x9e1   : > { %v2481_v16 = vcombine.low %v2403_v25, %v2410_v13  ;;  %v3527_v2 = vcombine.high %v2403_v25, %v2410_v13  ;;  %v3958_v7 = vpop.eup %3957 }
 0x9e2   : > { %v3960_v32 = vpop.eup %3959  ;;  %v2752_v49 = vmul.f32 %v3958_v7, %v3950_v53 }
 0x9e3   : > { %v2488_v3 = vrot.slane %v2481_v16, %v4390_v34  ;;  %v2496_v10 = vrot.slane %v3527_v2, %v4390_v34  ;;  %v2753_v58 = vmul.f32 %v3960_v32, %v3952_v55 }
 0x9e5   : > { %v2497_v5 = vcombine.low %v2488_v3, %v2496_v10  ;;  %v2498_v29 = vcombine.high %v2488_v3, %v2496_v10  ;;  %v2757_v11 = vpack.c.bf16 %v2753_v58, %v2753_v58 }
 0x9e7   : > { %v2505_v30 = vrot.slane %v2497_v5, %v4393_v41  ;;  %v2512_v31 = vrot.slane %v2498_v29, %v4393_v41 }
 0x9e9   : > { %v2760_v45 = vpack.c.bf16 %v2505_v30, %v2477_v39  ;;  %v2513_v46 = vcombine.high %v2505_v30, %v4140_v0  ;;  %v2514_v40 = vcombine.high %v2512_v31, %v4140_v0  ;;  %v2762_v52 = vpack.c.bf16 %v2512_v31, %v2479_v14 }
 0x9ea   : > { %v2756_v39 = vpack.c.bf16 %v2752_v49, %v2752_v49 }
 0x9eb   : > { %v2769_v50 = vsel %vm2767_vm6, %v2760_v45, 0  ;;  %v2761_v34 = vpack.c.bf16 %v2513_v46, %v2478_v43  ;;  %v2763_v53 = vpack.c.bf16 %v2514_v40, %v2480_v37  ;;  %v2861_v33 = vsel %vm2767_vm6, %v2762_v52, 0 }
 0x9ec   : > { %3751 = vmatpush3.bf16.msra.mxu0 %v2769_v50 }
 0x9ed   : > { %v2815_v41 = vsel %vm2767_vm6, %v2761_v34, 0  ;;  %3762 = vmatprep.subr.bf16.mxu0 %v4140_v0  ;;  %v2907_v43 = vsel %vm2767_vm6, %v2763_v53, 0 }
 0x9ee   : > { %3757 = vmatpush3.bf16.msra.mxu1 %v2815_v41 }
 0x9ef   : > { %3753 = vmatmul.mubr.msk.bf16.vlgmr.msra.gmra.mxu0 %vm2711_vm5, %v2756_v39  ;;  %3768 = vmatprep.subr.bf16.mxu1 %v4140_v0 }
 0x9f0   : > { %3763 = vmatpush3.bf16.msra.mxu0 %v2861_v33  ;;  %3764 = vmatprep.mubr.msk.bf16.mxu0 %vm4141_vm0, %v4140_v0  ;;  %v3147_v33 = vrot.slane %v4664_v20, %v623_v9 }
 0x9f1   : > { %3759 = vmatmul.mubr.msk.bf16.vlgmr.msra.gmra.mxu1 %vm2711_vm5, %v2757_v11  ;;  %3774 = vmatprep.subr.bf16.mxu0 %v4140_v0 }
 0x9f2   : > { %3769 = vmatpush3.bf16.msra.mxu1 %v2907_v43  ;;  %3770 = vmatprep.mubr.msk.bf16.mxu1 %vm4141_vm0, %v4140_v0 }
 0x9f3   : > { %3780 = vmatprep.subr.bf16.mxu1 %v4140_v0 }
 0xa08   : > { %v2744_v35 = vpop.xlane.xlu0 %2743 }
 0xa09   : > { %v2747_v36 = vpop.xlane.xlu1 %2746  ;;  %3961 = vrcp.f32 %v2744_v35 }
 0xa0a   : > { %3963 = vrcp.f32 %v2747_v36 }
 0xa16   : > { %v3962_v14 = vpop.eup %3961 }
 0xa17   : > { %v3964_v37 = vpop.eup %3963  ;;  %v2754_v55 = vmul.f32 %v3962_v14, %v4786_v1  ;;  %v1901_v1 = vld [vmem:[#allocation2 + $0x8] sm:$0xf] }
 0xa18   : > { %v2755_v26 = vmul.f32 %v3964_v37, %v4788_v4  ;;  %v3049_v6 = vsel %vm1351_vm4, %v1901_v1, 0 }
 0xa19   : > { %v2758_v59 = vpack.c.bf16 %v2754_v55, %v2754_v55 }
 0xa1a   : > { %v2759_v27 = vpack.c.bf16 %v2755_v26, %v2755_v26 }
 0xa1b   : > { %3765 = vmatmul.mubr.msk.bf16.vlgmr.msra.gmra.mxu0 %vm2711_vm5, %v2758_v59 }
 0xa1c   : > { %3771 = vmatmul.mubr.msk.bf16.vlgmr.msra.gmra.mxu1 %vm2711_vm5, %v2759_v27  ;;  %3776 = vmatprep.mubr.msk.bf16.mxu0 %vm4141_vm0, %v4140_v0 }
 0xa1d   : > { %3782 = vmatprep.mubr.msk.bf16.mxu1 %vm4141_vm0, %v4140_v0  ;;  %3775 = vmatpush3.bf16.msra.mxu0 %v2957_v60 }
 0xa1e   : > { %3786 = vmatprep.subr.bf16.mxu0 %v4140_v0  ;;  %3781 = vmatpush3.bf16.msra.mxu1 %v3003_v62 }
 0xa1f   : > { %3792 = vmatprep.subr.bf16.mxu1 %v4140_v0 }
 0xaaf   : > { %v2805_v4 = vpop.f32.mrf.mxu0 }
 0xab0   : > { %v2949_v38 = vpack.c.bf16 %v2805_v4, %v2805_v4  ;;  %v3925_v4 = vld [vmem:[#allocation5 + $0x8] sm:$0xff]  }
 0xab1   : > { %v3754_v42 = vpop.f32.mrf.mxu0  ;;  %v2851_v12 = vpop.f32.mrf.mxu1 }
 0xab2   : > { %v2950_v44 = vpack.c.bf16 %v2851_v12, %v2851_v12  ;;  %3777 = vmatmul.mubr.msk.bf16.vlgmr.msra.gmra.mxu0 %vm1101_vm2, %v2949_v38  ;;  %v3928_v38 = vld [vmem:[%s4951_s9 + $0x10] sm:$0xff]  }
 0xab3   : > { %v2808_v56 = vpop.f32.mrf.mxu0  ;;  %v3760_v57 = vpop.f32.mrf.mxu1  ;;  %3787 = vmatpush3.bf16.msra.mxu0 %v3049_v6  ;;  %3788 = vmatprep.mubr.msk.bf16.mxu0 %vm4141_vm0, %v4140_v0 }
 0xab4   : > { %3783 = vmatmul.mubr.msk.bf16.vlgmr.msra.gmra.mxu1 %vm1101_vm2, %v2950_v44  ;;  %3798 = vmatprep.subr.bf16.mxu0 %v4140_v0  ;;  %v3166_v44 = vrot.slane %v4664_v20, %v628_v24  ;;  %v3171_v56 = vrot.slane %v4664_v20, %v1730_v63  ;;  %v3930_v24 = vld [vmem:[%s4951_s9] sm:$0xff]  }
 0xab5   : > { %v3755_v17 = vpop.f32.mrf.mxu0  ;;  %v2854_v19 = vpop.f32.mrf.mxu1  ;;  %3793 = vmatpush3.bf16.msra.mxu1 %v3095_v15  ;;  %3794 = vmatprep.mubr.msk.bf16.mxu1 %vm4141_vm0, %v4140_v0  ;;  %v3540_v63 = vld [vmem:[%s4953_s11] ss:$0 sm:$0xff] }
 0xab6   : > { %3806 = vmatprep.subr.bf16.mxu1 %v4140_v0 }
 0xab7   : > { %v3761_v21 = vpop.f32.mrf.mxu1 }
 0xadb   : > { %v2897_v22 = vpop.f32.mrf.mxu0 }
 0xadc   : > { %v2951_v23 = vpack.c.bf16 %v2897_v22, %v2897_v22  ;;  %v2943_v25 = vpop.f32.mrf.mxu1  ;;  %v3929_v22 = vld [vmem:[%s4951_s9 + $0x8] sm:$0xff]  }
 0xadd   : > { %v2952_v13 = vpack.c.bf16 %v2943_v25, %v2943_v25  ;;  %v3766_v16 = vpop.f32.mrf.mxu0 }
 0xade   : > { %v3772_v2 = vpop.f32.mrf.mxu1  ;;  %3789 = vmatmul.mubr.msk.bf16.vlgmr.msra.gmra.mxu0 %vm1101_vm2, %v2951_v23 }
 0xadf   : > { %3795 = vmatmul.mubr.msk.bf16.vlgmr.msra.gmra.mxu1 %vm1101_vm2, %v2952_v13  ;;  %v2900_v3 = vpop.f32.mrf.mxu0  ;;  %3802 = vmatprep.mubr.msk.bf16.mxu0 %vm4141_vm0, %v4140_v0 }
 0xae0   : > { %v2946_v10 = vpop.f32.mrf.mxu1  ;;  %3814 = vmatprep.mubr.msk.bf16.mxu1 %vm4141_vm0, %v4140_v0  ;;  %3799 = vmatpush3.bf16.msra.mxu0 %v3925_v4 }
 0xae1   : > { %v3767_v5 = vpop.f32.mrf.mxu0  ;;  %3800 = vmatprep.subr.bf16.mxu0 %v4140_v0 }
 0xae2   : > { %v3773_v29 = vpop.f32.mrf.mxu1 }
 0xae4   : > { %3801 = vmatpush3.bf16.msra.mxu0 %v3926_v51 }
 0xb72   : > { %v2993_v7 = vpop.f32.mrf.mxu0 }
 0xb73   : > { %v3137_v34 = vsel %vm517_vm1, %v2993_v7, 0.0 }
 0xb74   : > { %v3778_v30 = vpop.f32.mrf.mxu0  ;;  %v3039_v31 = vpop.f32.mrf.mxu1 }
 0xb75   : > { %v3138_v50 = vsel %vm517_vm1, %v3039_v31, 0.0 }
 0xb76   : > { %v2996_v32 = vpop.f32.mrf.mxu0  ;;  %v3784_v45 = vpop.f32.mrf.mxu1  ;;  %v3139_v52 = vadd.f32 %v3138_v50, %v3137_v34 }
 0xb78   : > { %v3779_v46 = vpop.f32.mrf.mxu0  ;;  %v3042_v49 = vpop.f32.mrf.mxu1 }
 0xb7a   : > { %v3785_v40 = vpop.f32.mrf.mxu1 }
 0xb9e   : > { %v3085_v58 = vpop.f32.mrf.mxu0 }
 0xb9f   : > { %v3140_v41 = vsel %vm517_vm1, %v3085_v58, 0.0  ;;  %v3131_v39 = vpop.f32.mrf.mxu1 }
 0xba0   : > { %v3141_v53 = vadd.f32 %v3140_v41, %v3139_v52  ;;  %v3790_v11 = vpop.f32.mrf.mxu0  ;;  %v3142_v43 = vsel %vm517_vm1, %v3131_v39, 0.0  ;;  %v3339_v41 = vrot.slane %v4664_v20, %v1755_v48 }
 0xba1   : > { %v3796_v35 = vpop.f32.mrf.mxu1 }
 0xba2   : > { %v3143_v36 = vadd.f32 %v3142_v43, %v3141_v53  ;;  %v3088_v14 = vpop.f32.mrf.mxu0  ;;  %v3344_v53 = vrot.slane %v4664_v20, %v1765_v18 }
 0xba3   : > { %v3134_v37 = vpop.f32.mrf.mxu1 }
 0xba4   : > { %v3148_v55 = vadd.f32 %v3147_v33, %v3143_v36  ;;  %v3791_v26 = vpop.f32.mrf.mxu0 }
 0xba5   : > { %v3797_v59 = vpop.f32.mrf.mxu1 }
 0xba6   : > { %v3149_v27 = vadd.f32 %v3148_v55, %v4619_v54  ;;  %v3927_v54 = vld [vmem:[%s4951_s9 + $0x18] sm:$0xff]  }
 0xba7   : > { %3807 = vmatpush3.bf16.msra.mxu1 %v3927_v54 }
 0xba8   : > { %v3150_v28 = vsel %vm517_vm1, %v3149_v27, 0.0  ;;  %3808 = vmatprep.subr.bf16.mxu1 %v4140_v0 }
 0xba9   : > { %3151 = vadd.xlane.f32.xlu0 %v3150_v28 }
 0xbab   : > { %3809 = vmatpush3.bf16.msra.mxu1 %v3928_v38 }
 0xbac   : > { %3810 = vmatprep.subr.bf16.mxu1 %v4140_v0 }
 0xbaf   : > { %3811 = vmatpush3.bf16.msra.mxu1 %v3929_v22 }
 0xbb0   : > { %3812 = vmatprep.subr.bf16.mxu1 %v4140_v0  ;;  %v3253_v0 = vrot.slane %v4664_v20, %v1750_v47 }
 0xbb3   : > { %3813 = vmatpush3.bf16.msra.mxu1 %v3930_v24 }
 0xc32   : > { %v3152_v60 = vpop.xlane.xlu0 %3151 }
 0xc33   : > { %v3153_v61 = vmul.f32 0.03125, %v3152_v60 }
 0xc35   : > { %v3154_v62 = vsub.f32 %v3149_v27, %v3153_v61 }
 0xc37   : > { %v3155_v1 = vmul.f32 %v3154_v62, %v3154_v62 }
 0xc39   : > { %v3156_v9 = vsel %vm517_vm1, %v3155_v1, 0.0 }
 0xc3a   : > { %3157 = vadd.xlane.f32.xlu0 %v3156_v9 }
 0xcc3   : > { %v3158_v6 = vpop.xlane.xlu0 %3157 }
 0xcc4   : > { %v3159_v42 = vmul.f32 0.03125, %v3158_v6 }
 0xcc6   : > { %v3160_v12 = vadd.f32 1e-05, %v3159_v42 }
 0xcc8   : > { %3965 = vrsqrt.f32 %v3160_v12 }
 0xcd5   : > { %v3966_v15 = vpop.eup %3965 }
 0xcd6   : > { %v3162_v57 = vmul.f32 %v3966_v15, %v3154_v62 }
 0xcd8   : > { %v3167_v17 = vmul.f32 %v3166_v44, %v3162_v57 }
 0xcda   : > { %v3172_v19 = vadd.f32 %v3171_v56, %v3167_v17 }
 0xcdc   : > { %v3173_v21 = vpack.c.bf16 %v3172_v19, %v3172_v19 }
 0xcde   : > { %3803 = vmatmul.mubr.msk.bf16.vlgmr.msra.gmra.mxu0 %vm517_vm1, %v3173_v21 }
 0xd9e   : > { %v3234_v23 = vpop.f32.mrf.mxu0 }
 0xd9f   : > { %v3235_v25 = vadd.f32 %v3540_v63, %v3234_v23 }
 0xda0   : > { %v3804_v13 = vpop.f32.mrf.mxu0 }
 0xda1   : > { %v3240_v16 = vmax.f32 %v3235_v25, 0.0 }
 0xda2   : > { %v3237_v2 = vpop.f32.mrf.mxu0 }
 0xda3   : > { %v3241_v3 = vpack.c.bf16 %v3240_v16, %v3240_v16 }
 0xda4   : > { %v3805_v10 = vpop.f32.mrf.mxu0 }
 0xda5   : > { %3815 = vmatmul.mubr.msk.bf16.vlgmr.msra.gmra.mxu1 %vm3278_vm7, %v3241_v3 }
 0xe65   : > { %v3316_v5 = vpop.f32.mrf.mxu1 }
 0xe66   : > { %v3317_v29 = vadd.f32 %v3316_v5, %v3253_v0 }
 0xe67   : > { %v3816_v7 = vpop.f32.mrf.mxu1 }
 0xe68   : > { %v3322_v30 = vadd.f32 %v3317_v29, %v3172_v19 }
 0xe69   : > { %v3319_v31 = vpop.f32.mrf.mxu1 }
 0xe6a   : > { %v3323_v32 = vsel %vm517_vm1, %v3322_v30, 0.0 }
 0xe6b   : > { %3324 = vadd.xlane.f32.xlu1 %v3323_v32  ;;  %v3817_v45 = vpop.f32.mrf.mxu1 }
 0xef4   : > { %v3325_v46 = vpop.xlane.xlu1 %3324 }
 0xef5   : > { %v3326_v49 = vmul.f32 0.03125, %v3325_v46 }
 0xef7   : > { %v3327_v40 = vsub.f32 %v3322_v30, %v3326_v49 }
 0xef9   : > { %v3328_v50 = vmul.f32 %v3327_v40, %v3327_v40 }
 0xefb   : > { %v3329_v34 = vsel %vm517_vm1, %v3328_v50, 0.0 }
 0xefc   : > { %3330 = vadd.xlane.f32.xlu0 %v3329_v34 }
 0xf85   : > { %v3331_v52 = vpop.xlane.xlu0 %3330 }
 0xf86   : > { %v3332_v47 = vmul.f32 0.03125, %v3331_v52 }
 0xf88   : > { %v3333_v58 = vadd.f32 1e-05, %v3332_v47 }
 0xf8a   : > { %3967 = vrsqrt.f32 %v3333_v58 }
 0xf97   : > { %v3968_v39 = vpop.eup %3967 }
 0xf98   : > { %v3335_v33 = vmul.f32 %v3968_v39, %v3327_v40 }
 0xf9a   : > { %v3340_v11 = vmul.f32 %v3339_v41, %v3335_v33 }
 0xf9c   : > { %v3345_v43 = vadd.f32 %v3344_v53, %v3340_v11 }
 0xf9e   : > { %3346 = vst.msk [vmem:[%s477_s17] sm:$0xff] %vm517_vm1, %v3345_v43 }
 0xf9f   : > { %4060 = shalt.err (!%p4057_p9)
}
 0xfa0   : > { %s4061_s19 = scalar_lea.hbm %s3360_s16, 128  ;;  %s4065_s14 = scalar_lea.hbm %s4954_s12, 256 }
 0xfa1   : > { %p4062_p12 = scmp.ne.s32.totalorder %s3360_s16, %s4061_s19  ;;  %p4066_p2 = scmp.lt.s32.totalorder %s3360_s16, %s4954_s12 }
 0xfa2   : > { %p4067_p5 = scmp.lt.s32.totalorder %s4065_s14, %s4061_s19 }
 0xfa3   : > { %p4063_p1 = pnand %p4062_p12, %p4255_p4 }
 0xfa4   : > { %p4068_p0 = por %p4067_p5, %p4066_p2 }
 0xfa5   : > { %p4064_p8 = pneg %p4063_p1 }
 0xfa7   : > { %p4069_p10 = pnand %p4068_p0, %p4064_p8 }
 0xfa9   : > { %4072 = shalt.err (!%p4069_p10)
}
 0xfaa   : > { %3830 = dma.vmem_to_hbm [thread:$0]  (%p4255_p4), %s3363_s18, 128, %s3360_s16, %s3348_s23  }
 0xfab PF: > { %p3852_p11 = scmp.ge.s32.totalorder %s4131_s26, 2  ;;  %s3374_s30 = sand.u32 1, %s4111_s21  }
 0xfac   : > { %p4972_p13 = scmp.ne.s32.totalorder %s4965_s15, 0  ;;  %s3375_s29 = scalar_lea.sflag [#allocation4], %s3374_s30 }
 0xfae   : > { %p3843_p3 = pnand %p3852_p11, %p4972_p13 }
 0xfb0   : > { %p3844_p6 = pneg %p3843_p3 }
 0xfb2   : > { %4106 = dma.done.wait (%p3844_p6), %s3375_s29, 128  }
 0xfb3   : > { %4108 = vsyncadd (%p3844_p6), %s3375_s29, 4294967168  ;;  %s27_s26 = sadd.s32 1, %s4131_s26   ;;  %s4973_s27 = sld [smem:[#allocation12_spill]] }
 0xfb4   : > { %p24_p7 = scmp.ge.s32.totalorder %s27_s26, 4   ;;  %s4974_s23 = sld [smem:[#allocation15_spill]] }
 0xfb5   : > { %s4975_s24 = sld [smem:[#allocation13_spill]]  ;;  %s4977_s21 = smov %s4115_s22 }
 0xfb6   : > { %s4976_s25 = sld [smem:[#allocation14_spill]]  ;;  %26 = sbr.rel (!%p24_p7) target bundleno = 8 (0x8), region = 120 }
 0xfb9   : > { %s4978_s22 = smov %s4973_s27 }
 0xfbb   :  { %3380 = vsyncpa [#allocation3], 1 }
 0xfbc   :  { %3382 = vsyncpa [#allocation3 + $0x1], 1 }
 0xfbd   :  { %3383 = vsyncpa [#allocation6], 1 }
 0xfbe   :  { %3384 = vsyncpa [#allocation4], 1 }
 0xfbf   :  { %3386 = vsyncpa [#allocation4 + $0x1], 1 }

</bundles_post_ra>
